<compile_context>
chip_gen: v5e
topology: v5e:2x2
jax: 0.10.0
libtpu: 0.0.40
codegen_flags: <defaults>
</compile_context>

<pallas_src>
import functools

import jax
import jax.numpy as jnp
from jax.experimental import pallas as pl
from jax.experimental.pallas import tpu as pltpu

NEG_BIG = -1e30  # bias value for padded class lanes -> exp underflows to 0.0
N3_PAD = 128     # last-layer output lanes after padding (lane-dense store)


def mlp_kernel(x_ref, w1_ref, b1_ref, w2_ref, b2_ref, w3_ref, b3_ref, o_ref):
    # x_ref: (TB, 784) f32 ; w*_ref: (in, out) bf16 ; b*_ref: (1, out) f32
    x = x_ref[...].astype(jnp.bfloat16)   # in-kernel cast: no extra HBM pass over x

    h1 = jnp.dot(x, w1_ref[...], preferred_element_type=jnp.float32)
    h1 = jnp.maximum(h1 + b1_ref[...], 0.0)                        # (TB, 512) f32

    h2 = jnp.dot(h1.astype(jnp.bfloat16), w2_ref[...],
                 preferred_element_type=jnp.float32)
    h2 = jnp.maximum(h2 + b2_ref[...], 0.0)                        # (TB, 128) f32

    logits = jnp.dot(h2.astype(jnp.bfloat16), w3_ref[...],
                     preferred_element_type=jnp.float32)
    logits = logits + b3_ref[...]                                  # (TB, 128); lanes >= 10 are ~-1e30

    # Numerically-stabilized softmax over the class axis; padded lanes -> 0.
    # Exact divide (not approx reciprocal) so rows sum to 1 to f32 precision;
    # this kernel is MXU/HBM-bound, so the VPU/EUP cost is hidden.
    m = jnp.max(logits, axis=-1, keepdims=True)
    e = jnp.exp(logits - m)
    denom = jnp.sum(e, axis=-1, keepdims=True)
    o_ref[...] = (e / denom).astype(o_ref.dtype)


def _round_up(x, m):
    return (x + m - 1) // m * m


def _choose_tile(batch, tile_b, target_steps=2):
    """Batch tile: multiple of 8 (f32 sublane), <= tile_b, and -- when the batch is
    large enough -- small enough that the grid has >= target_steps steps so the
    "parallel" batch axis can shard across both v7x TensorCores."""
    tb = min(tile_b, _round_up(pl.cdiv(batch, target_steps), 8))
    if tb >= batch:
        return batch            # single full-batch tile (block == full dim is always legal)
    return tb


def prepare_params(params):
    """One-time parameter prep, hoisted out of the forward:
    pad fc3 from 10 -> 128 lanes (padded bias = -1e30 so softmax gives exactly 0
    on padded lanes) and cast matmul operands to bf16 / biases to f32."""
    w1, b1, w2, b2, w3, b3 = params
    w3p = jnp.pad(w3, ((0, 0), (0, N3_PAD - w3.shape[1])))
    b3p = jnp.pad(b3, ((0, 0), (0, N3_PAD - b3.shape[1])), constant_values=NEG_BIG)
    return (w1.astype(jnp.bfloat16), b1.astype(jnp.float32),
            w2.astype(jnp.bfloat16), b2.astype(jnp.float32),
            w3p.astype(jnp.bfloat16), b3p.astype(jnp.float32))


@functools.partial(jax.jit, static_argnames=("tile_b", "out_dtype"))
def muti_perceptron_forward(x_nchw, prepped_params, tile_b=1024, out_dtype=jnp.float32):
    """x_nchw: (B, 1, 28, 28) float32. `prepped_params` from prepare_params().
    Returns (B, 10) softmax probabilities.
    out_dtype=jnp.bfloat16 halves the output HBM write (useful on v6e, which is
    HBM-roofline-bound); default stays f32."""
    w1b, b1f, w2b, b2f, w3b, b3f = prepped_params
    B = x_nchw.shape[0]
    x_flat = x_nchw.reshape(B, 28 * 28).astype(jnp.float32)   # == torch .view(-1, 784)

    TB = _choose_tile(B, tile_b)
    grid = (pl.cdiv(B, TB),)   # ragged last tile handled by Pallas partial-block masking
    const = lambda i: (0, 0)   # weights/biases: same block every grid step (VMEM-resident)

    w_bytes_bf16 = 2 * (784 * 512 + 512 * 128 + 128 * N3_PAD)
    out_itemsize = jnp.dtype(out_dtype).itemsize

    # VMEM budget for the chosen tile (double-buffered x/out + weight buffers +
    # in-kernel casts/activations), with headroom; capped at v7x's 64 MiB per TC.
    vmem_est = (2 * TB * 784 * 4               # x double buffer (f32)
                + 2 * TB * N3_PAD * 4          # output double buffer
                + 2 * w_bytes_bf16             # weight/bias buffers
                + TB * (784 * 2 + 512 * 6 + 128 * 12))   # casts + h1/h2/softmax temps
    vmem_limit = min(64 * 1024 * 1024, max(32 * 1024 * 1024, int(1.25 * vmem_est)))

    flops = 2 * B * (784 * 512 + 512 * 128 + 128 * N3_PAD)
    bytes_accessed = (
        B * 784 * 4                        # x (f32, cast in-kernel)
        + w_bytes_bf16                     # weights (bf16)
        + (512 + 128 + N3_PAD) * 4         # biases (f32)
        + B * N3_PAD * out_itemsize        # output
    )

    out = pl.pallas_call(
        mlp_kernel,
        out_shape=jax.ShapeDtypeStruct((B, N3_PAD), out_dtype),
        grid=grid,
        in_specs=[
            # x streamed per batch tile (auto double-buffered DMA). If xprof shows
            # exposed x DMA on v6e, add pipeline_mode=pl.Buffered(3) here.
            pl.BlockSpec((TB, 784), lambda i: (i, 0)),
            pl.BlockSpec((784, 512), const),
            pl.BlockSpec((1, 512), const),
            pl.BlockSpec((512, 128), const),
            pl.BlockSpec((1, 128), const),
            pl.BlockSpec((128, N3_PAD), const),
            pl.BlockSpec((1, N3_PAD), const),
        ],
        out_specs=pl.BlockSpec((TB, N3_PAD), lambda i: (i, 0)),
        compiler_params=pltpu.CompilerParams(
            dimension_semantics=("parallel",),
            vmem_limit_bytes=vmem_limit,
        ),
        cost_estimate=pl.CostEstimate(
            flops=flops,
            transcendentals=B * N3_PAD,
            bytes_accessed=bytes_accessed,
        ),
    )(x_flat, w1b, b1f, w2b, b2f, w3b, b3f)

    # A consumer that can read the padded lane-dense slab directly can skip this
    # slice (it materializes a second (B, 10) copy); kept here to match the
    # PyTorch module's (B, 10) return.
    return out[:, :10]


def init_params(key):
    """Deterministic synthetic parameters (PyTorch Linear stores W as (out, in);
    we pre-transpose to (in, out) for the kernel). Small std keeps softmax
    well-conditioned for the numerical check."""
    k1, k2, k3, k4, k5, k6 = jax.random.split(key, 6)
    std = 0.05
    w1 = jax.random.normal(k1, (784, 512), jnp.float32) * std
    b1 = jax.random.normal(k2, (1, 512), jnp.float32) * std
    w2 = jax.random.normal(k3, (512, 128), jnp.float32) * std
    b2 = jax.random.normal(k4, (1, 128), jnp.float32) * std
    w3 = jax.random.normal(k5, (128, 10), jnp.float32) * std
    b3 = jax.random.normal(k6, (1, 10), jnp.float32) * std
    return w1, b1, w2, b2, w3, b3


def reference_forward(x_nchw, params):
    """Pure-JAX f32 reference (matches the PyTorch forward)."""
    w1, b1, w2, b2, w3, b3 = params
    x = x_nchw.reshape(x_nchw.shape[0], -1)
    h1 = jnp.maximum(x @ w1 + b1, 0.0)
    h2 = jnp.maximum(h1 @ w2 + b2, 0.0)
    logits = h2 @ w3 + b3
    return jax.nn.softmax(logits, axis=1)


if __name__ == "__main__":
    key = jax.random.PRNGKey(0)
    kx, kp = jax.random.split(key)

    # MNIST-like input: batch=2, NCHW (2, 1, 28, 28)
    x = jax.random.normal(kx, (2, 1, 28, 28), jnp.float32)
    params = init_params(kp)
    prepped = prepare_params(params)     # one-time prep, hoisted out of the forward

    out = muti_perceptron_forward(x, prepped)
    out = jax.block_until_ready(out)

    ref = reference_forward(x, params)
    assert out.shape == (2, 10)
    # Exact softmax normalization -> rows sum to 1 to f32 precision.
    assert jnp.allclose(jnp.sum(out, axis=1), 1.0, atol=1e-3)
    # bf16 matmul operands -> loosened tolerance vs the f32 reference.
    assert jnp.allclose(out, ref, atol=2e-2, rtol=0.0)

    print("KERNEL_OK")
</pallas_src>

<mosaic_0001>
module attributes {stable_mosaic.version = 11 : i64} {
  func.func @mlp_kernel(%arg0: i32, %arg1: memref<2x784xf32, #tpu.memory_space<vmem>>, %arg2: memref<784x512xbf16, #tpu.memory_space<vmem>>, %arg3: memref<1x512xf32, #tpu.memory_space<vmem>>, %arg4: memref<512x128xbf16, #tpu.memory_space<vmem>>, %arg5: memref<1x128xf32, #tpu.memory_space<vmem>>, %arg6: memref<128x128xbf16, #tpu.memory_space<vmem>>, %arg7: memref<1x128xf32, #tpu.memory_space<vmem>>, %arg8: memref<2x128xf32, #tpu.memory_space<vmem>>) attributes {dimension_semantics = [#tpu.dimension_semantics<parallel>], iteration_bounds = array<i64: 1>, scalar_prefetch = 0 : i64, scratch_operands = 0 : i64, tpu.core_type = #tpu.core_type<tc>, window_params = [{transform_indices = @transform_0, window_bounds = array<i64: 2, 784>}, {pipeline_mode = #tpu.pipeline_mode<synchronous>, transform_indices = @transform_1, window_bounds = array<i64: 784, 512>}, {pipeline_mode = #tpu.pipeline_mode<synchronous>, transform_indices = @transform_2, window_bounds = array<i64: 1, 512>}, {pipeline_mode = #tpu.pipeline_mode<synchronous>, transform_indices = @transform_3, window_bounds = array<i64: 512, 128>}, {pipeline_mode = #tpu.pipeline_mode<synchronous>, transform_indices = @transform_4, window_bounds = array<i64: 1, 128>}, {pipeline_mode = #tpu.pipeline_mode<synchronous>, transform_indices = @transform_5, window_bounds = array<i64: 128, 128>}, {pipeline_mode = #tpu.pipeline_mode<synchronous>, transform_indices = @transform_6, window_bounds = array<i64: 1, 128>}, {transform_indices = @transform_7, window_bounds = array<i64: 2, 128>}]} {
    %c0 = arith.constant 0 : index
    %c0_0 = arith.constant 0 : index
    %0 = vector.load %arg1[%c0, %c0_0] : memref<2x784xf32, #tpu.memory_space<vmem>>, vector<2x784xf32>
    %1 = arith.truncf %0 : vector<2x784xf32> to vector<2x784xbf16>
    %c0_1 = arith.constant 0 : index
    %c0_2 = arith.constant 0 : index
    %2 = vector.load %arg2[%c0_1, %c0_2] : memref<784x512xbf16, #tpu.memory_space<vmem>>, vector<784x512xbf16>
    %cst = arith.constant dense<0.000000e+00> : vector<2x512xf32>
    %3 = tpu.matmul %1, %2, %cst {dimension_numbers = #tpu.dot_dimension_numbers<[1], [0], [0], [1], [0, 0, 1, 1], [], []>} : vector<2x784xbf16>, vector<784x512xbf16>, vector<2x512xf32> -> vector<2x512xf32>
    %c0_3 = arith.constant 0 : index
    %c0_4 = arith.constant 0 : index
    %4 = vector.load %arg3[%c0_3, %c0_4] : memref<1x512xf32, #tpu.memory_space<vmem>>, vector<1x512xf32>
    %5 = vector.broadcast %4 : vector<1x512xf32> to vector<2x512xf32>
    %6 = arith.addf %3, %5 : vector<2x512xf32>
    %cst_5 = arith.constant 0.000000e+00 : f32
    %7 = vector.broadcast %cst_5 : f32 to vector<2x512xf32>
    %8 = arith.maximumf %6, %7 : vector<2x512xf32>
    %9 = arith.truncf %8 : vector<2x512xf32> to vector<2x512xbf16>
    %c0_6 = arith.constant 0 : index
    %c0_7 = arith.constant 0 : index
    %10 = vector.load %arg4[%c0_6, %c0_7] : memref<512x128xbf16, #tpu.memory_space<vmem>>, vector<512x128xbf16>
    %cst_8 = arith.constant dense<0.000000e+00> : vector<2x128xf32>
    %11 = tpu.matmul %9, %10, %cst_8 {dimension_numbers = #tpu.dot_dimension_numbers<[1], [0], [0], [1], [0, 0, 1, 1], [], []>} : vector<2x512xbf16>, vector<512x128xbf16>, vector<2x128xf32> -> vector<2x128xf32>
    %c0_9 = arith.constant 0 : index
    %c0_10 = arith.constant 0 : index
    %12 = vector.load %arg5[%c0_9, %c0_10] : memref<1x128xf32, #tpu.memory_space<vmem>>, vector<1x128xf32>
    %13 = vector.broadcast %12 : vector<1x128xf32> to vector<2x128xf32>
    %14 = arith.addf %11, %13 : vector<2x128xf32>
    %cst_11 = arith.constant 0.000000e+00 : f32
    %15 = vector.broadcast %cst_11 : f32 to vector<2x128xf32>
    %16 = arith.maximumf %14, %15 : vector<2x128xf32>
    %17 = arith.truncf %16 : vector<2x128xf32> to vector<2x128xbf16>
    %c0_12 = arith.constant 0 : index
    %c0_13 = arith.constant 0 : index
    %18 = vector.load %arg6[%c0_12, %c0_13] : memref<128x128xbf16, #tpu.memory_space<vmem>>, vector<128x128xbf16>
    %cst_14 = arith.constant dense<0.000000e+00> : vector<2x128xf32>
    %19 = tpu.matmul %17, %18, %cst_14 {dimension_numbers = #tpu.dot_dimension_numbers<[1], [0], [0], [1], [0, 0, 1, 1], [], []>} : vector<2x128xbf16>, vector<128x128xbf16>, vector<2x128xf32> -> vector<2x128xf32>
    %c0_15 = arith.constant 0 : index
    %c0_16 = arith.constant 0 : index
    %20 = vector.load %arg7[%c0_15, %c0_16] : memref<1x128xf32, #tpu.memory_space<vmem>>, vector<1x128xf32>
    %21 = vector.broadcast %20 : vector<1x128xf32> to vector<2x128xf32>
    %22 = arith.addf %19, %21 : vector<2x128xf32>
    %cst_17 = arith.constant dense<0xFF800000> : vector<2xf32>
    %23 = vector.multi_reduction <maximumf>, %22, %cst_17 [1] : vector<2x128xf32> to vector<2xf32>
    %24 = vector.shape_cast %23 : vector<2xf32> to vector<2x1xf32>
    %25 = vector.broadcast %24 : vector<2x1xf32> to vector<2x128xf32>
    %26 = arith.subf %22, %25 : vector<2x128xf32>
    %27 = math.exp %26 : vector<2x128xf32>
    %cst_18 = arith.constant dense<0.000000e+00> : vector<2xf32>
    %28 = vector.multi_reduction <add>, %27, %cst_18 [1] : vector<2x128xf32> to vector<2xf32>
    %29 = vector.shape_cast %28 : vector<2xf32> to vector<2x1xf32>
    %30 = vector.broadcast %29 : vector<2x1xf32> to vector<2x128xf32>
    %31 = arith.divf %27, %30 : vector<2x128xf32>
    %c0_19 = arith.constant 0 : index
    %c0_20 = arith.constant 0 : index
    %32 = vector.load %arg8[%c0_19, %c0_20] : memref<2x128xf32, #tpu.memory_space<vmem>>, vector<2x128xf32>
    tpu.vector_store %arg8[%c0_19, %c0_20], %31 {strides = array<i32>} : memref<2x128xf32, #tpu.memory_space<vmem>>, vector<2x128xf32>,
    return
  }
  func.func @transform_0(%arg0: i32) -> (i32, i32) {
    %c0_i32 = arith.constant 0 : i32
    %c0_i32_0 = arith.constant 0 : i32
    return %arg0, %c0_i32 : i32, i32
  }
  func.func @transform_1(%arg0: i32) -> (i32, i32) {
    %c0_i32 = arith.constant 0 : i32
    %c0_i32_0 = arith.constant 0 : i32
    %c0_i32_1 = arith.constant 0 : i32
    return %c0_i32, %c0_i32_0 : i32, i32
  }
  func.func @transform_2(%arg0: i32) -> (i32, i32) {
    %c0_i32 = arith.constant 0 : i32
    %c0_i32_0 = arith.constant 0 : i32
    %c0_i32_1 = arith.constant 0 : i32
    return %c0_i32, %c0_i32_0 : i32, i32
  }
  func.func @transform_3(%arg0: i32) -> (i32, i32) {
    %c0_i32 = arith.constant 0 : i32
    %c0_i32_0 = arith.constant 0 : i32
    %c0_i32_1 = arith.constant 0 : i32
    return %c0_i32, %c0_i32_0 : i32, i32
  }
  func.func @transform_4(%arg0: i32) -> (i32, i32) {
    %c0_i32 = arith.constant 0 : i32
    %c0_i32_0 = arith.constant 0 : i32
    %c0_i32_1 = arith.constant 0 : i32
    return %c0_i32, %c0_i32_0 : i32, i32
  }
  func.func @transform_5(%arg0: i32) -> (i32, i32) {
    %c0_i32 = arith.constant 0 : i32
    %c0_i32_0 = arith.constant 0 : i32
    %c0_i32_1 = arith.constant 0 : i32
    return %c0_i32, %c0_i32_0 : i32, i32
  }
  func.func @transform_6(%arg0: i32) -> (i32, i32) {
    %c0_i32 = arith.constant 0 : i32
    %c0_i32_0 = arith.constant 0 : i32
    %c0_i32_1 = arith.constant 0 : i32
    return %c0_i32, %c0_i32_0 : i32, i32
  }
  func.func @transform_7(%arg0: i32) -> (i32, i32) {
    %c0_i32 = arith.constant 0 : i32
    %c0_i32_0 = arith.constant 0 : i32
    return %arg0, %c0_i32 : i32, i32
  }
}

</mosaic_0001>

<bundles_post_ra>
// kernel: muti_perceptron_forward.1
= control target key start
LH: loop header
LB: loop body
LE: loop exit
PB: predicated region body
PF: predicated region fallthrough
CT: control target
= control target key end

     0   :  { %12 = vsyncpa [#allocation3], 0  ;;  %s3523_s0 = inlined_call_operand.vmem [shape: f32[2,784], index: 0, kind: input, shape index: {}]   ;;  %s3524_s1 = inlined_call_operand.hbm [shape: bf16[784,512], index: 1, kind: input, shape index: {}]   ;;  %s3525_s2 = inlined_call_operand.vmem [shape: f32[1,512], index: 2, kind: input, shape index: {}]   ;;  %s3526_s3 = inlined_call_operand.hbm [shape: bf16[512,128], index: 3, kind: input, shape index: {}]   ;;  %s3527_s4 = inlined_call_operand.vmem [shape: f32[1,128], index: 4, kind: input, shape index: {}]   ;;  %s3528_s5 = inlined_call_operand.vmem [shape: bf16[128,128], index: 5, kind: input, shape index: {}]   ;;  %s3529_s6 = inlined_call_operand.vmem [shape: f32[1,128], index: 6, kind: input, shape index: {}]   ;;  %s3530_s7 = inlined_call_operand.hbm [shape: f32[2,128], index: 7, kind: output, shape index: {}]  }
   0x1   :  { %13 = vsyncpa [#allocation6], 0 }
   0x2   :  { %14 = vsyncpa [#allocation4], 0  ;;  %s21_s26 = sshll.u32 %s3524_s1, 4  ;;  %s3364_s27 = smov [#allocation2]   ;;  %s22_s26 = int_to_ptr.hbm [resolvable:$true] %s21_s26 }
   0x3   :  { %s23_s28 = sshll.u32 %s3364_s27, 4  ;;  %s36_s8 = sshll.u32 %s3526_s3, 4  ;;  %s24_s28 = int_to_ptr.vmem [resolvable:$true] %s23_s28  ;;  %s37_s8 = int_to_ptr.hbm [resolvable:$true] %s36_s8 }
   0x4   :  { %s3365_s9 = smov 256   ;;  %s3366_s10 = smov 16  }
   0x5   :  { %29 = dma.hbm_to_vmem [thread:$0]  %s22_s26, 25088, %s24_s28, [#allocation3], %s3365_s9, %s3365_s9, %s3366_s10  }
   0x6   :  { %s3367_s11 = smov [#allocation5]   ;;  %s3368_s13 = smov 64  }
   0x7   :  { %s38_s12 = sshll.u32 %s3367_s11, 4  ;;  %s3369_s14 = smov 4   ;;  %s39_s12 = int_to_ptr.vmem [resolvable:$true] %s38_s12 }
   0x8   :  { %44 = dma.hbm_to_vmem [thread:$0]  %s37_s8, 4096, %s39_s12, [#allocation6], %s3368_s13, %s3368_s13, %s3369_s14  }
   0x9   :  { %3358 = dma.done.wait [#allocation3], 25088  }
   0xa   :  { %3359 = vsyncadd [#allocation3], 4294942208 }
   0xb   :  { %3360 = dma.done.wait [#allocation6], 4096  }
   0xc   :  { %3361 = vsyncadd [#allocation6], 4294963200  ;;  %v2203_v0 = vld [vmem:[#allocation2 + $0xe0] sm:$0xf]  ;;  %v3067_v1 = vld [vmem:[#allocation2 + $0xec] sm:$0xf0] }
   0xd   :  { %v2331_v2 = vld [vmem:[#allocation2 + $0x1e0] sm:$0xf]  ;;  %v2204_v3 = vor.u32 %v3067_v1, %v2203_v0  ;;  %v3099_v4 = vld [vmem:[#allocation2 + $0x1ec] sm:$0xf0]  ;;  %vm1274_vm0 = vcmask 130048   ;;  %vm2045_vm1 = vcmask 1041408  }
   0xe   :  { %v2459_v5 = vld [vmem:[#allocation2 + $0x2e0] sm:$0xf]  ;;  %v3131_v6 = vld [vmem:[#allocation2 + $0x2ec] sm:$0xf0]  ;;  %v2332_v7 = vor.u32 %v3099_v4, %v2331_v2  ;;  %s2078_s1 = sshll.u32 %s3530_s7, 4  ;;  %s2079_s1 = int_to_ptr.hbm [resolvable:$true] %s2078_s1 }
   0xf   :  { %v2460_v8 = vor.u32 %v3131_v6, %v2459_v5  ;;  %v2587_v9 = vld [vmem:[#allocation2 + $0x3e0] sm:$0xf]  ;;  %v3163_v10 = vld [vmem:[#allocation2 + $0x3ec] sm:$0xf0]  ;;  %1278 = vmatpush.bf16.msra.mxu0 %v2204_v3 }
  0x10   :  { %v2187_v11 = vld [vmem:[#allocation2 + $0xc0] sm:$0xf]  ;;  %v2588_v12 = vor.u32 %v3163_v10, %v2587_v9  ;;  %v3063_v13 = vld [vmem:[#allocation2 + $0xcc] sm:$0xf0]  ;;  %1291 = vmatpush.bf16.msra.mxu1 %v2332_v7 }
  0x11   :  { %v2315_v14 = vld [vmem:[#allocation2 + $0x1c0] sm:$0xf]  ;;  %v3095_v15 = vld [vmem:[#allocation2 + $0x1cc] sm:$0xf0]  ;;  %1304 = vmatpush.bf16.msra.mxu2 %v2460_v8  ;;  %v2188_v16 = vor.u32 %v3063_v13, %v2187_v11 }
  0x12   :  { %v2316_v17 = vor.u32 %v3095_v15, %v2315_v14  ;;  %v2443_v18 = vld [vmem:[#allocation2 + $0x2c0] sm:$0xf]  ;;  %v3127_v19 = vld [vmem:[#allocation2 + $0x2cc] sm:$0xf0]  ;;  %1317 = vmatpush.bf16.msra.mxu3 %v2588_v12 }
  0x13   :  { %v2571_v20 = vld [vmem:[#allocation2 + $0x3c0] sm:$0xf]  ;;  %v2444_v21 = vor.u32 %v3127_v19, %v2443_v18  ;;  %v3159_v22 = vld [vmem:[#allocation2 + $0x3cc] sm:$0xf0]  ;;  %1279 = vmatpush.bf16.msra.mxu0 %v2188_v16 }
  0x14   :  { %v2171_v23 = vld [vmem:[#allocation2 + $0xa0] sm:$0xf]  ;;  %v3059_v24 = vld [vmem:[#allocation2 + $0xac] sm:$0xf0]  ;;  %v2572_v25 = vor.u32 %v3159_v22, %v2571_v20  ;;  %1292 = vmatpush.bf16.msra.mxu1 %v2316_v17 }
  0x15   :  { %v2299_v26 = vld [vmem:[#allocation2 + $0x1a0] sm:$0xf]  ;;  %v3091_v27 = vld [vmem:[#allocation2 + $0x1ac] sm:$0xf0]  ;;  %v2172_v29 = vor.u32 %v3059_v24, %v2171_v23  ;;  %1305 = vmatpush.bf16.msra.mxu2 %v2444_v21  ;;  %v60_v21 = vld [vmem:[%s3523_s0] sm:$0xff] }
  0x16   :  { %v2427_v28 = vld [vmem:[#allocation2 + $0x2a0] sm:$0xf]  ;;  %v3123_v30 = vld [vmem:[#allocation2 + $0x2ac] sm:$0xf0]  ;;  %v2300_v33 = vor.u32 %v3091_v27, %v2299_v26  ;;  %1318 = vmatpush.bf16.msra.mxu3 %v2572_v25  ;;  %64 = vst [vmem:[#allocation1] ss:$4 sm:$0xff] %v60_v21 }
  0x17   :  { %v2555_v31 = vld [vmem:[#allocation2 + $0x3a0] sm:$0xf]  ;;  %v3155_v32 = vld [vmem:[#allocation2 + $0x3ac] sm:$0xf0]  ;;  %v2428_v34 = vor.u32 %v3123_v30, %v2427_v28  ;;  %1280 = vmatpush.bf16.msra.mxu0 %v2172_v29  ;;  %v3085_v21 = vld [vmem:[#allocation2 + $0x184] sm:$0xf] }
  0x18   :  { %v2155_v35 = vld [vmem:[#allocation2 + $0x80] sm:$0xf]  ;;  %v3055_v36 = vld [vmem:[#allocation2 + $0x8c] sm:$0xf0]  ;;  %v2556_v38 = vor.u32 %v3155_v32, %v2555_v31  ;;  %1293 = vmatpush.bf16.msra.mxu1 %v2300_v33 }
  0x19   :  { %v2283_v37 = vld [vmem:[#allocation2 + $0x180] sm:$0xf]  ;;  %v3087_v39 = vld [vmem:[#allocation2 + $0x18c] sm:$0xf0]  ;;  %v2156_v44 = vor.u32 %v3055_v36, %v2155_v35  ;;  %1306 = vmatpush.bf16.msra.mxu2 %v2428_v34  ;;  %v3065_v34 = vld [vmem:[#allocation2 + $0xe4] sm:$0xf] }
  0x1a   :  { %v2411_v40 = vld [vmem:[#allocation2 + $0x280] sm:$0xf]  ;;  %v3119_v41 = vld [vmem:[#allocation2 + $0x28c] sm:$0xf0]  ;;  %v2284_v45 = vor.u32 %v3087_v39, %v2283_v37  ;;  %1319 = vmatpush.bf16.msra.mxu3 %v2556_v38  ;;  %v2205_v35 = vld [vmem:[#allocation2 + $0xf0] sm:$0xf0] }
  0x1b   :  { %v2539_v42 = vld [vmem:[#allocation2 + $0x380] sm:$0xf]  ;;  %v3151_v43 = vld [vmem:[#allocation2 + $0x38c] sm:$0xf0]  ;;  %v2412_v46 = vor.u32 %v3119_v41, %v2411_v40  ;;  %1281 = vmatpush.bf16.msra.mxu0 %v2156_v44  ;;  %v3097_v40 = vld [vmem:[#allocation2 + $0x1e4] sm:$0xf] }
  0x1c   :  { %v2139_v47 = vld [vmem:[#allocation2 + $0x60] sm:$0xf]  ;;  %v3051_v48 = vld [vmem:[#allocation2 + $0x6c] sm:$0xf0]  ;;  %v2540_v50 = vor.u32 %v3151_v43, %v2539_v42  ;;  %1294 = vmatpush.bf16.msra.mxu1 %v2284_v45  ;;  %v2333_v41 = vld [vmem:[#allocation2 + $0x1f0] sm:$0xf0] }
  0x1d   :  { %v2267_v49 = vld [vmem:[#allocation2 + $0x160] sm:$0xf]  ;;  %v3083_v51 = vld [vmem:[#allocation2 + $0x16c] sm:$0xf0]  ;;  %v2140_v56 = vor.u32 %v3051_v48, %v2139_v47  ;;  %1307 = vmatpush.bf16.msra.mxu2 %v2412_v46  ;;  %v2208_v48 = vor.u32 %v3065_v34, %v2205_v35 }
  0x1e   :  { %v2395_v52 = vld [vmem:[#allocation2 + $0x260] sm:$0xf]  ;;  %v3115_v53 = vld [vmem:[#allocation2 + $0x26c] sm:$0xf0]  ;;  %v2268_v57 = vor.u32 %v3083_v51, %v2267_v49  ;;  %1320 = vmatpush.bf16.msra.mxu3 %v2540_v50  ;;  %v3061_v50 = vld [vmem:[#allocation2 + $0xc4] sm:$0xf] }
  0x1f   :  { %v2523_v54 = vld [vmem:[#allocation2 + $0x360] sm:$0xf]  ;;  %v3147_v55 = vld [vmem:[#allocation2 + $0x36c] sm:$0xf0]  ;;  %v2396_v58 = vor.u32 %v3115_v53, %v2395_v52  ;;  %1282 = vmatpush.bf16.msra.mxu0 %v2140_v56  ;;  %v2189_v51 = vld [vmem:[#allocation2 + $0xd0] sm:$0xf0] }
  0x20   :  { %v2123_v59 = vld [vmem:[#allocation2 + $0x40] sm:$0xf]  ;;  %v3047_v60 = vld [vmem:[#allocation2 + $0x4c] sm:$0xf0]  ;;  %v2524_v62 = vor.u32 %v3147_v55, %v2523_v54  ;;  %1295 = vmatpush.bf16.msra.mxu1 %v2268_v57 }
  0x21   :  { %v2251_v61 = vld [vmem:[#allocation2 + $0x140] sm:$0xf]  ;;  %v3079_v63 = vld [vmem:[#allocation2 + $0x14c] sm:$0xf0]  ;;  %v2124_v4 = vor.u32 %v3047_v60, %v2123_v59  ;;  %1308 = vmatpush.bf16.msra.mxu2 %v2396_v58  ;;  %v2336_v59 = vor.u32 %v3097_v40, %v2333_v41 }
  0x22   :  { %v2379_v0 = vld [vmem:[#allocation2 + $0x240] sm:$0xf]  ;;  %v3111_v1 = vld [vmem:[#allocation2 + $0x24c] sm:$0xf0]  ;;  %v2252_v6 = vor.u32 %v3079_v63, %v2251_v61  ;;  %1321 = vmatpush.bf16.msra.mxu3 %v2524_v62  ;;  %v3093_v61 = vld [vmem:[#allocation2 + $0x1c4] sm:$0xf] }
  0x23   :  { %v2507_v2 = vld [vmem:[#allocation2 + $0x340] sm:$0xf]  ;;  %v3143_v3 = vld [vmem:[#allocation2 + $0x34c] sm:$0xf0]  ;;  %v2380_v7 = vor.u32 %v3111_v1, %v2379_v0  ;;  %1283 = vmatpush.bf16.msra.mxu0 %v2124_v4  ;;  %v2317_v62 = vld [vmem:[#allocation2 + $0x1d0] sm:$0xf0]  ;;  %v2192_v1 = vor.u32 %v3061_v50, %v2189_v51 }
  0x24   :  { %v2107_v5 = vld [vmem:[#allocation2 + $0x20] sm:$0xf]  ;;  %v3043_v8 = vld [vmem:[#allocation2 + $0x2c] sm:$0xf0]  ;;  %v2508_v11 = vor.u32 %v3143_v3, %v2507_v2  ;;  %1296 = vmatpush.bf16.msra.mxu1 %v2252_v6  ;;  %v3057_v6 = vld [vmem:[#allocation2 + $0xa4] sm:$0xf] }
  0x25   :  { %v2235_v9 = vld [vmem:[#allocation2 + $0x120] sm:$0xf]  ;;  %v3075_v10 = vld [vmem:[#allocation2 + $0x12c] sm:$0xf0]  ;;  %v2108_v18 = vor.u32 %v3043_v8, %v2107_v5  ;;  %1309 = vmatpush.bf16.msra.mxu2 %v2380_v7  ;;  %v2173_v7 = vld [vmem:[#allocation2 + $0xb0] sm:$0xf0] }
  0x26   :  { %v2363_v12 = vld [vmem:[#allocation2 + $0x220] sm:$0xf]  ;;  %v3107_v13 = vld [vmem:[#allocation2 + $0x22c] sm:$0xf0]  ;;  %v2236_v22 = vor.u32 %v3075_v10, %v2235_v9  ;;  %1322 = vmatpush.bf16.msra.mxu3 %v2508_v11  ;;  %v2320_v9 = vor.u32 %v3093_v61, %v2317_v62  ;;  %v3089_v11 = vld [vmem:[#allocation2 + $0x1a4] sm:$0xf] }
  0x27   :  { %v2491_v14 = vld [vmem:[#allocation2 + $0x320] sm:$0xf]  ;;  %v3139_v15 = vld [vmem:[#allocation2 + $0x32c] sm:$0xf0]  ;;  %v2364_v23 = vor.u32 %v3107_v13, %v2363_v12  ;;  %1284 = vmatpush.bf16.msra.mxu0 %v2108_v18  ;;  %v2301_v12 = vld [vmem:[#allocation2 + $0x1b0] sm:$0xf0] }
  0x28   :  { %v2091_v16 = vld [vmem:[#allocation2] sm:$0xf]  ;;  %v3039_v17 = vld [vmem:[#allocation2 + $0xc] sm:$0xf0]  ;;  %v2492_v26 = vor.u32 %v3139_v15, %v2491_v14  ;;  %1297 = vmatpush.bf16.msra.mxu1 %v2236_v22  ;;  %v2176_v14 = vor.u32 %v3057_v6, %v2173_v7  ;;  %v2304_v22 = vor.u32 %v3089_v11, %v2301_v12  ;;  %v3073_v62 = vld [vmem:[#allocation2 + $0x124] sm:$0xf] }
  0x29   :  { %v2219_v19 = vld [vmem:[#allocation2 + $0x100] sm:$0xf]  ;;  %v3071_v20 = vld [vmem:[#allocation2 + $0x10c] sm:$0xf0]  ;;  %v2092_v33 = vor.u32 %v3039_v17, %v2091_v16  ;;  %1310 = vmatpush.bf16.msra.mxu2 %v2364_v23  ;;  %v2093_v11 = vld [vmem:[#allocation2 + $0x10] sm:$0xf0] }
  0x2a   :  { %v2347_v24 = vld [vmem:[#allocation2 + $0x200] sm:$0xf]  ;;  %v3103_v25 = vld [vmem:[#allocation2 + $0x20c] sm:$0xf0]  ;;  %v2220_v37 = vor.u32 %v3071_v20, %v2219_v19  ;;  %1323 = vmatpush.bf16.msra.mxu3 %v2492_v26  ;;  %v3053_v19 = vld [vmem:[#allocation2 + $0x84] sm:$0xf] }
  0x2b   :  { %v2475_v27 = vld [vmem:[#allocation2 + $0x300] sm:$0xf]  ;;  %v3135_v28 = vld [vmem:[#allocation2 + $0x30c] sm:$0xf0]  ;;  %v2348_v38 = vor.u32 %v3103_v25, %v2347_v24  ;;  %1285 = vmatpush.bf16.msra.mxu0 %v2092_v33  ;;  %v2157_v20 = vld [vmem:[#allocation2 + $0x90] sm:$0xf0] }
  0x2c   :  { %v2715_v29 = vld [vmem:[#allocation2 + $0x4e0] sm:$0xf]  ;;  %v3195_v30 = vld [vmem:[#allocation2 + $0x4ec] sm:$0xf0]  ;;  %v2476_v42 = vor.u32 %v3135_v28, %v2475_v27  ;;  %1298 = vmatpush.bf16.msra.mxu1 %v2220_v37  ;;  %v2285_v24 = vld [vmem:[#allocation2 + $0x190] sm:$0xf0]  ;;  %v2160_v28 = vor.u32 %v3053_v19, %v2157_v20 }
  0x2d   :  { %v2843_v31 = vld [vmem:[#allocation2 + $0x5e0] sm:$0xf]  ;;  %v3227_v32 = vld [vmem:[#allocation2 + $0x5ec] sm:$0xf0]  ;;  %v2716_v43 = vor.u32 %v3195_v30, %v2715_v29  ;;  %1311 = vmatpush.bf16.msra.mxu2 %v2348_v38  ;;  %v2141_v33 = vld [vmem:[#allocation2 + $0x70] sm:$0xf0]  ;;  %v2288_v34 = vor.u32 %v3085_v21, %v2285_v24 }
  0x2e   :  { %v2859_v36 = vld [vmem:[#allocation2 + $0x600] sm:$0xf]  ;;  %v3231_v39 = vld [vmem:[#allocation2 + $0x60c] sm:$0xf0]  ;;  %v2844_v47 = vor.u32 %v3227_v32, %v2843_v31  ;;  %1324 = vmatpush.bf16.msra.mxu3 %v2476_v42  ;;  %v3049_v32 = vld [vmem:[#allocation2 + $0x64] sm:$0xf] }
  0x2f   :  { %v2699_v44 = vld [vmem:[#allocation2 + $0x4c0] sm:$0xf]  ;;  %v3191_v45 = vld [vmem:[#allocation2 + $0x4cc] sm:$0xf0]  ;;  %v2860_v55 = vor.u32 %v3231_v39, %v2859_v36  ;;  %1330 = vmatpush.bf16.msrb.mxu0 %v2716_v43  ;;  %v3081_v36 = vld [vmem:[#allocation2 + $0x164] sm:$0xf]  ;;  %v2144_v39 = vor.u32 %v3049_v32, %v2141_v33 }
  0x30   :  { %v2827_v46 = vld [vmem:[#allocation2 + $0x5c0] sm:$0xf]  ;;  %v3223_v49 = vld [vmem:[#allocation2 + $0x5cc] sm:$0xf0]  ;;  %v2700_v60 = vor.u32 %v3191_v45, %v2699_v44  ;;  %1343 = vmatpush.bf16.msrb.mxu1 %v2844_v47  ;;  %v2269_v37 = vld [vmem:[#allocation2 + $0x170] sm:$0xf0] }
  0x31   :  { %v69_v52 = vld.sshfl [vmem:[#allocation1 + $0x10] sm:$0xff pattern:$0x73625140]  ;;  %v67_v53 = vld.sshfl [vmem:[#allocation1] sm:$0xff pattern:$0x73625140]  ;;  %v2828_v0 = vor.u32 %v3223_v49, %v2827_v46  ;;  %1363 = vmatpush.bf16.msrb.mxu2 %v2860_v55  ;;  %v2272_v47 = vor.u32 %v3081_v36, %v2269_v37 }
  0x32   :  { %v3420_v54 = vpack.c.bf16 %v69_v52, %v69_v52  ;;  %v3422_v56 = vpack.c.bf16 %v67_v53, %v67_v53  ;;  %v70_v57 = vld.sshfl [vmem:[#allocation1 + $0x18] sm:$0xff pattern:$0x73625140]  ;;  %v68_v58 = vld.sshfl [vmem:[#allocation1 + $0x8] sm:$0xff pattern:$0x73625140]  ;;  %1369 = vmatpush.bf16.msrb.mxu3 %v2208_v48 }
  0x33   :  { %v3424_v63 = vpack.c.bf16 %v70_v57, %v70_v57  ;;  %v2683_v2 = vld [vmem:[#allocation2 + $0x4a0] sm:$0xf]  ;;  %v3187_v3 = vld [vmem:[#allocation2 + $0x4ac] sm:$0xf0]  ;;  %v3428_v8 = vpack.c.bf16 %v68_v58, %v68_v58  ;;  %1331 = vmatpush.bf16.msrb.mxu0 %v2700_v60  ;;  %v3045_v44 = vld [vmem:[#allocation2 + $0x44] sm:$0xf] }
  0x34   :  { %v2811_v4 = vld [vmem:[#allocation2 + $0x5a0] sm:$0xf]  ;;  %1312 = vmatmul.bf16.vlgmr.msra.gmra.mxu2 %v3420_v54  ;;  %1286 = vmatmul.bf16.vlgmr.msra.gmra.mxu0 %v3422_v56  ;;  %v3219_v5 = vld [vmem:[#allocation2 + $0x5ac] sm:$0xf0]  ;;  %v2684_v10 = vor.u32 %v3187_v3, %v2683_v2  ;;  %v2125_v45 = vld [vmem:[#allocation2 + $0x50] sm:$0xf0] }
  0x35   :  { %1325 = vmatmul.bf16.vlgmr.msra.gmra.mxu3 %v3424_v63  ;;  %1382 = vmatpush.bf16.msra.mxu2 %v2336_v59  ;;  %v2812_v13 = vor.u32 %v3219_v5, %v2811_v4  ;;  %v2667_v15 = vld [vmem:[#allocation2 + $0x480] sm:$0xf]  ;;  %v3183_v16 = vld [vmem:[#allocation2 + $0x48c] sm:$0xf0]  ;;  %v3077_v46 = vld [vmem:[#allocation2 + $0x144] sm:$0xf]  ;;  %v2128_v53 = vor.u32 %v3045_v44, %v2125_v45 }
  0x36   :  { %1344 = vmatpush.bf16.msrb.mxu1 %v2828_v0  ;;  %1370 = vmatpush.bf16.msrb.mxu3 %v2192_v1  ;;  %v2795_v17 = vld [vmem:[#allocation2 + $0x580] sm:$0xf]  ;;  %v3215_v18 = vld [vmem:[#allocation2 + $0x58c] sm:$0xf0]  ;;  %v2668_v23 = vor.u32 %v3183_v16, %v2667_v15  ;;  %v2253_v49 = vld [vmem:[#allocation2 + $0x150] sm:$0xf0] }
  0x37   :  { %1299 = vmatmul.bf16.vlgmr.msra.gmra.mxu1 %v3428_v8  ;;  %1332 = vmatpush.bf16.msrb.mxu0 %v2684_v10  ;;  %v2651_v25 = vld [vmem:[#allocation2 + $0x460] sm:$0xf]  ;;  %v3179_v26 = vld [vmem:[#allocation2 + $0x46c] sm:$0xf0]  ;;  %v2796_v27 = vor.u32 %v3215_v18, %v2795_v17  ;;  %v3041_v59 = vld [vmem:[#allocation2 + $0x24] sm:$0xf]  ;;  %v2256_v1 = vor.u32 %v3077_v46, %v2253_v49 }
  0x38   :  { %v2779_v29 = vld [vmem:[#allocation2 + $0x560] sm:$0xf]  ;;  %v3211_v30 = vld [vmem:[#allocation2 + $0x56c] sm:$0xf0]  ;;  %v2652_v35 = vor.u32 %v3179_v26, %v2651_v25  ;;  %v2109_v60 = vld [vmem:[#allocation2 + $0x30] sm:$0xf0] }
  0x39   :  { %1383 = vmatpush.bf16.msra.mxu2 %v2320_v9  ;;  %v61_v31 = vld [vmem:[%s3523_s0 + $0x8] sm:$0x3f]  ;;  %v2780_v38 = vor.u32 %v3211_v30, %v2779_v29  ;;  %v3175_v41 = vld [vmem:[#allocation2 + $0x44c] sm:$0xf0]  ;;  %v2237_v0 = vld [vmem:[#allocation2 + $0x130] sm:$0xf0]  ;;  %v2112_v7 = vor.u32 %v3041_v59, %v2109_v60 }
  0x3a   :  { %1345 = vmatpush.bf16.msrb.mxu1 %v2812_v13  ;;  %1371 = vmatpush.bf16.msrb.mxu3 %v2176_v14  ;;  %66 = vst [vmem:[#allocation1 + $0x20] ss:$4 sm:$0xff] %v61_v31  ;;  %v2635_v40 = vld [vmem:[#allocation2 + $0x440] sm:$0xf]  ;;  %v3207_v43 = vld [vmem:[#allocation2 + $0x54c] sm:$0xf0]  ;;  %v2240_v18 = vor.u32 %v3073_v62, %v2237_v0 }
  0x3b   :  { %1333 = vmatpush.bf16.msrb.mxu0 %v2668_v23  ;;  %v2763_v42 = vld [vmem:[#allocation2 + $0x540] sm:$0xf]  ;;  %v2636_v48 = vor.u32 %v3175_v41, %v2635_v40  ;;  %v3171_v51 = vld [vmem:[#allocation2 + $0x42c] sm:$0xf0]  ;;  %v3037_v10 = vld [vmem:[#allocation2 + $0x4] sm:$0xf] }
  0x3c   :  { %v2619_v50 = vld [vmem:[#allocation2 + $0x420] sm:$0xf]  ;;  %v2764_v52 = vor.u32 %v3207_v43, %v2763_v42  ;;  %v3203_v58 = vld [vmem:[#allocation2 + $0x52c] sm:$0xf0]  ;;  %v3129_v12 = vld [vmem:[#allocation2 + $0x2e4] sm:$0xf]  ;;  %v2096_v23 = vor.u32 %v3037_v10, %v2093_v11 }
  0x3d   :  { %1384 = vmatpush.bf16.msra.mxu2 %v2304_v22  ;;  %v2747_v55 = vld [vmem:[#allocation2 + $0x520] sm:$0xf]  ;;  %v2620_v2 = vor.u32 %v3171_v51, %v2619_v50  ;;  %v3167_v4 = vld [vmem:[#allocation2 + $0x40c] sm:$0xf0]  ;;  %v2461_v13 = vld [vmem:[#allocation2 + $0x2f0] sm:$0xf0] }
  0x3e   :  { %1346 = vmatpush.bf16.msrb.mxu1 %v2796_v27  ;;  %1372 = vmatpush.bf16.msrb.mxu3 %v2160_v28  ;;  %v2603_v3 = vld [vmem:[#allocation2 + $0x400] sm:$0xf]  ;;  %v2748_v6 = vor.u32 %v3203_v58, %v2747_v55  ;;  %v3199_v9 = vld [vmem:[#allocation2 + $0x50c] sm:$0xf0]  ;;  %v3161_v14 = vld [vmem:[#allocation2 + $0x3e4] sm:$0xf]  ;;  %v2464_v26 = vor.u32 %v3129_v12, %v2461_v13 }
  0x3f   :  { %1334 = vmatpush.bf16.msrb.mxu0 %v2652_v35  ;;  %v2731_v5 = vld [vmem:[#allocation2 + $0x500] sm:$0xf]  ;;  %v2589_v15 = vld [vmem:[#allocation2 + $0x3f0] sm:$0xf0]  ;;  %v3193_v16 = vld [vmem:[#allocation2 + $0x4e4] sm:$0xf]  ;;  %v2604_v19 = vor.u32 %v3167_v4, %v2603_v3 }
  0x40   :  { %v2717_v17 = vld [vmem:[#allocation2 + $0x4f0] sm:$0xf0]  ;;  %v3069_v21 = vld [vmem:[#allocation2 + $0x104] sm:$0xf]  ;;  %v2732_v22 = vor.u32 %v3199_v9, %v2731_v5  ;;  %v2592_v27 = vor.u32 %v3161_v14, %v2589_v15 }
  0x41   :  { %1385 = vmatpush.bf16.msra.mxu2 %v2288_v34  ;;  %v73_v57 = vld.sshfl [vmem:[#allocation1 + $0x30] sm:$0xff pattern:$0x73625140]  ;;  %v71_v20 = vld.sshfl [vmem:[#allocation1 + $0x20] sm:$0xff pattern:$0x73625140]  ;;  %v2720_v31 = vor.u32 %v3193_v16, %v2717_v17 }
  0x42   :  { %1347 = vmatpush.bf16.msrb.mxu1 %v2780_v38  ;;  %1373 = vmatpush.bf16.msrb.mxu3 %v2144_v39  ;;  %v3435_v61 = vpack.c.bf16 %v73_v57, %v73_v57  ;;  %v2221_v24 = vld [vmem:[#allocation2 + $0x110] sm:$0xf0]  ;;  %v72_v25 = vld.sshfl [vmem:[#allocation1 + $0x28] sm:$0xff pattern:$0x73625140]  ;;  %v3439_v32 = vpack.c.bf16 %v71_v20, %v71_v20 }
  0x43   :  { %1335 = vmatpush.bf16.msrb.mxu0 %v2636_v48  ;;  %v3225_v28 = vld [vmem:[#allocation2 + $0x5e4] sm:$0xf]  ;;  %v2845_v29 = vld [vmem:[#allocation2 + $0x5f0] sm:$0xf0]  ;;  %v2224_v36 = vor.u32 %v3069_v21, %v2221_v24  ;;  %v3441_v37 = vpack.c.bf16 %v72_v25, %v72_v25 }
  0x44   :  { %2873 = vmatmul.msk.bf16.vlgmr.msrb.gmra.mxu2 %vm1274_vm0, %v3435_v61  ;;  %v3125_v30 = vld [vmem:[#allocation2 + $0x2c4] sm:$0xf]  ;;  %v2445_v33 = vld [vmem:[#allocation2 + $0x2d0] sm:$0xf0]  ;;  %v2848_v40 = vor.u32 %v3225_v28, %v2845_v29 }
  0x45   :  { %1386 = vmatpush.bf16.msra.mxu2 %v2272_v47  ;;  %v3157_v34 = vld [vmem:[#allocation2 + $0x3c4] sm:$0xf]  ;;  %v2573_v35 = vld [vmem:[#allocation2 + $0x3d0] sm:$0xf0]  ;;  %v2448_v41 = vor.u32 %v3125_v30, %v2445_v33 }
  0x46   :  { %1348 = vmatpush.bf16.msrb.mxu1 %v2764_v52  ;;  %1374 = vmatpush.bf16.msrb.mxu3 %v2128_v53  ;;  %v3189_v38 = vld [vmem:[#allocation2 + $0x4c4] sm:$0xf]  ;;  %v2701_v39 = vld [vmem:[#allocation2 + $0x4d0] sm:$0xf0]  ;;  %v2576_v42 = vor.u32 %v3157_v34, %v2573_v35 }
  0x47   :  { %1336 = vmatpush.bf16.msrb.mxu0 %v2620_v2  ;;  %v3221_v43 = vld [vmem:[#allocation2 + $0x5c4] sm:$0xf]  ;;  %v2829_v44 = vld [vmem:[#allocation2 + $0x5d0] sm:$0xf0]  ;;  %v2704_v46 = vor.u32 %v3189_v38, %v2701_v39 }
  0x48   :  { %v3121_v45 = vld [vmem:[#allocation2 + $0x2a4] sm:$0xf]  ;;  %v2429_v47 = vld [vmem:[#allocation2 + $0x2b0] sm:$0xf0]  ;;  %v2832_v52 = vor.u32 %v3221_v43, %v2829_v44 }
  0x49   :  { %1387 = vmatpush.bf16.msra.mxu2 %v2256_v1  ;;  %v3153_v48 = vld [vmem:[#allocation2 + $0x3a4] sm:$0xf]  ;;  %v2557_v49 = vld [vmem:[#allocation2 + $0x3b0] sm:$0xf0]  ;;  %v2432_v53 = vor.u32 %v3121_v45, %v2429_v47 }
  0x4a   :  { %1349 = vmatpush.bf16.msrb.mxu1 %v2748_v6  ;;  %1375 = vmatpush.bf16.msrb.mxu3 %v2112_v7  ;;  %v3185_v50 = vld [vmem:[#allocation2 + $0x4a4] sm:$0xf]  ;;  %v2685_v51 = vld [vmem:[#allocation2 + $0x4b0] sm:$0xf0]  ;;  %v2560_v55 = vor.u32 %v3153_v48, %v2557_v49 }
  0x4b   :  { %1337 = vmatpush.bf16.msrb.mxu0 %v2604_v19  ;;  %v3217_v57 = vld [vmem:[#allocation2 + $0x5a4] sm:$0xf]  ;;  %v2813_v58 = vld [vmem:[#allocation2 + $0x5b0] sm:$0xf0]  ;;  %v2688_v60 = vor.u32 %v3185_v50, %v2685_v51 }
  0x4c   :  { %v3117_v59 = vld [vmem:[#allocation2 + $0x284] sm:$0xf]  ;;  %v2413_v62 = vld [vmem:[#allocation2 + $0x290] sm:$0xf0]  ;;  %v2816_v4 = vor.u32 %v3217_v57, %v2813_v58  ;;  %v2211_v57 = vld [vmem:[#allocation2 + $0xe8] sm:$0xf] }
  0x4d   :  { %1388 = vmatpush.bf16.msra.mxu2 %v2240_v18  ;;  %v3149_v0 = vld [vmem:[#allocation2 + $0x384] sm:$0xf]  ;;  %v2541_v1 = vld [vmem:[#allocation2 + $0x390] sm:$0xf0]  ;;  %v2416_v5 = vor.u32 %v3117_v59, %v2413_v62  ;;  %v3068_v58 = vld [vmem:[#allocation2 + $0xf4] sm:$0xf0] }
  0x4e   :  { %1350 = vmatpush.bf16.msrb.mxu1 %v2732_v22  ;;  %1376 = vmatpush.bf16.msrb.mxu3 %v2096_v23  ;;  %v3181_v2 = vld [vmem:[#allocation2 + $0x484] sm:$0xf]  ;;  %v2669_v3 = vld [vmem:[#allocation2 + $0x490] sm:$0xf0]  ;;  %v2544_v6 = vor.u32 %v3149_v0, %v2541_v1  ;;  %v2339_v59 = vld [vmem:[#allocation2 + $0x1e8] sm:$0xf] }
  0x4f   :  { %1395 = vmatpush.bf16.msra.mxu0 %v2464_v26  ;;  %v3213_v7 = vld [vmem:[#allocation2 + $0x584] sm:$0xf]  ;;  %v2797_v9 = vld [vmem:[#allocation2 + $0x590] sm:$0xf0]  ;;  %v2672_v11 = vor.u32 %v3181_v2, %v2669_v3  ;;  %v3100_v62 = vld [vmem:[#allocation2 + $0x1f4] sm:$0xf0] }
  0x50   :  { %1338 = vmatmul.bf16.vlgmr.msrb.gmra.mxu0 %v3439_v32  ;;  %v3113_v10 = vld [vmem:[#allocation2 + $0x264] sm:$0xf]  ;;  %v2397_v12 = vld [vmem:[#allocation2 + $0x270] sm:$0xf0]  ;;  %v2800_v17 = vor.u32 %v3213_v7, %v2797_v9  ;;  %v2212_v9 = vor.u32 %v3068_v58, %v2211_v57  ;;  %v3052_v57 = vld [vmem:[#allocation2 + $0x74] sm:$0xf0] }
  0x51   :  { %1389 = vmatpush.bf16.msra.mxu2 %v2224_v36  ;;  %1351 = vmatmul.bf16.vlgmr.msrb.gmra.mxu1 %v3441_v37  ;;  %v3145_v13 = vld [vmem:[#allocation2 + $0x364] sm:$0xf]  ;;  %v2525_v14 = vld [vmem:[#allocation2 + $0x370] sm:$0xf0]  ;;  %v2400_v18 = vor.u32 %v3113_v10, %v2397_v12  ;;  %v3132_v10 = vld [vmem:[#allocation2 + $0x2f4] sm:$0xf0] }
  0x52   :  { %1408 = vmatpush.bf16.msra.mxu1 %v2592_v27  ;;  %1421 = vmatpush.bf16.msra.mxu3 %v2720_v31  ;;  %v3177_v15 = vld [vmem:[#allocation2 + $0x464] sm:$0xf]  ;;  %v2653_v16 = vld [vmem:[#allocation2 + $0x470] sm:$0xf0]  ;;  %v2528_v19 = vor.u32 %v3145_v13, %v2525_v14  ;;  %v3164_v12 = vld [vmem:[#allocation2 + $0x3f4] sm:$0xf0]  ;;  %v2340_v13 = vor.u32 %v3100_v62, %v2339_v59 }
  0x53   :  { %1377 = vmatmul.bf16.vlgmr.msrb.gmra.mxu3 %v3422_v56  ;;  %1396 = vmatpush.bf16.msra.mxu0 %v2448_v41  ;;  %v3209_v20 = vld [vmem:[#allocation2 + $0x564] sm:$0xf]  ;;  %v2781_v21 = vld [vmem:[#allocation2 + $0x570] sm:$0xf0]  ;;  %v2656_v23 = vor.u32 %v3177_v15, %v2653_v16  ;;  %v2195_v15 = vld [vmem:[#allocation2 + $0xc8] sm:$0xf] }
  0x54   :  { %1390 = vmatmul.bf16.vlgmr.msra.gmra.mxu2 %v3428_v8  ;;  %v3109_v22 = vld [vmem:[#allocation2 + $0x244] sm:$0xf]  ;;  %v2381_v24 = vld [vmem:[#allocation2 + $0x250] sm:$0xf0]  ;;  %v2784_v29 = vor.u32 %v3209_v20, %v2781_v21  ;;  %v3064_v16 = vld [vmem:[#allocation2 + $0xd4] sm:$0xf0] }
  0x55   :  { %1434 = vmatpush.bf16.msrb.mxu2 %v2848_v40  ;;  %v3141_v25 = vld [vmem:[#allocation2 + $0x344] sm:$0xf]  ;;  %v2509_v26 = vld [vmem:[#allocation2 + $0x350] sm:$0xf0]  ;;  %v2384_v30 = vor.u32 %v3109_v22, %v2381_v24  ;;  %v2451_v22 = vld [vmem:[#allocation2 + $0x2c8] sm:$0xf] }
  0x56   :  { %1409 = vmatpush.bf16.msra.mxu1 %v2576_v42  ;;  %1422 = vmatpush.bf16.msra.mxu3 %v2704_v46  ;;  %v3173_v27 = vld [vmem:[#allocation2 + $0x444] sm:$0xf]  ;;  %v2637_v28 = vld [vmem:[#allocation2 + $0x450] sm:$0xf0]  ;;  %v2512_v31 = vor.u32 %v3141_v25, %v2509_v26  ;;  %v3128_v24 = vld [vmem:[#allocation2 + $0x2d4] sm:$0xf0] }
  0x57   :  { %1397 = vmatpush.bf16.msra.mxu0 %v2432_v53  ;;  %v3205_v33 = vld [vmem:[#allocation2 + $0x544] sm:$0xf]  ;;  %v2765_v34 = vld [vmem:[#allocation2 + $0x550] sm:$0xf0]  ;;  %v2640_v36 = vor.u32 %v3173_v27, %v2637_v28  ;;  %v2579_v25 = vld [vmem:[#allocation2 + $0x3c8] sm:$0xf] }
  0x58   :  { %v3105_v35 = vld [vmem:[#allocation2 + $0x224] sm:$0xf]  ;;  %v2365_v38 = vld [vmem:[#allocation2 + $0x230] sm:$0xf0]  ;;  %v2768_v43 = vor.u32 %v3205_v33, %v2765_v34  ;;  %v3160_v26 = vld [vmem:[#allocation2 + $0x3d4] sm:$0xf0]  ;;  %v2452_v33 = vor.u32 %v3128_v24, %v2451_v22 }
  0x59   :  { %1435 = vmatpush.bf16.msrb.mxu2 %v2832_v52  ;;  %v3137_v39 = vld [vmem:[#allocation2 + $0x324] sm:$0xf]  ;;  %v2493_v40 = vld [vmem:[#allocation2 + $0x330] sm:$0xf0]  ;;  %v2368_v46 = vor.u32 %v3105_v35, %v2365_v38  ;;  %v2179_v28 = vld [vmem:[#allocation2 + $0xa8] sm:$0xf]  ;;  %v2580_v34 = vor.u32 %v3160_v26, %v2579_v25 }
  0x5a   :  { %1410 = vmatpush.bf16.msra.mxu1 %v2560_v55  ;;  %1423 = vmatpush.bf16.msra.mxu3 %v2688_v60  ;;  %v3169_v41 = vld [vmem:[#allocation2 + $0x424] sm:$0xf]  ;;  %v2621_v42 = vld [vmem:[#allocation2 + $0x430] sm:$0xf0]  ;;  %v2496_v47 = vor.u32 %v3137_v39, %v2493_v40  ;;  %v2435_v35 = vld [vmem:[#allocation2 + $0x2a8] sm:$0xf] }
  0x5b   :  { %1398 = vmatpush.bf16.msra.mxu0 %v2416_v5  ;;  %v3201_v44 = vld [vmem:[#allocation2 + $0x524] sm:$0xf]  ;;  %v2749_v45 = vld [vmem:[#allocation2 + $0x530] sm:$0xf0]  ;;  %v2624_v51 = vor.u32 %v3169_v41, %v2621_v42  ;;  %v3124_v38 = vld [vmem:[#allocation2 + $0x2b4] sm:$0xf0] }
  0x5c   :  { %v3101_v48 = vld [vmem:[#allocation2 + $0x204] sm:$0xf]  ;;  %v2349_v49 = vld [vmem:[#allocation2 + $0x210] sm:$0xf0]  ;;  %v2752_v60 = vor.u32 %v3201_v44, %v2749_v45  ;;  %v2563_v39 = vld [vmem:[#allocation2 + $0x3a8] sm:$0xf] }
  0x5d   :  { %1436 = vmatpush.bf16.msrb.mxu2 %v2816_v4  ;;  %v3133_v50 = vld [vmem:[#allocation2 + $0x304] sm:$0xf]  ;;  %v2477_v52 = vld [vmem:[#allocation2 + $0x310] sm:$0xf0]  ;;  %v2352_v2 = vor.u32 %v3101_v48, %v2349_v49  ;;  %v3156_v40 = vld [vmem:[#allocation2 + $0x3b4] sm:$0xf0] }
  0x5e   :  { %1411 = vmatpush.bf16.msra.mxu1 %v2544_v6  ;;  %1424 = vmatpush.bf16.msra.mxu3 %v2672_v11  ;;  %v3165_v53 = vld [vmem:[#allocation2 + $0x404] sm:$0xf]  ;;  %v2605_v55 = vld [vmem:[#allocation2 + $0x410] sm:$0xf0]  ;;  %v2480_v3 = vor.u32 %v3133_v50, %v2477_v52  ;;  %v2467_v6 = vld [vmem:[#allocation2 + $0x2e8] sm:$0xf] }
  0x5f   :  { %1399 = vmatpush.bf16.msra.mxu0 %v2400_v18  ;;  %v3229_v0 = vld [vmem:[#allocation2 + $0x604] sm:$0xf]  ;;  %v2861_v1 = vld [vmem:[#allocation2 + $0x610] sm:$0xf0]  ;;  %v2608_v7 = vor.u32 %v3165_v53, %v2605_v55  ;;  %v2595_v11 = vld [vmem:[#allocation2 + $0x3e8] sm:$0xf]  ;;  %v2468_v20 = vor.u32 %v3132_v10, %v2467_v6 }
  0x60   :  { %v3197_v4 = vld [vmem:[#allocation2 + $0x504] sm:$0xf]  ;;  %v2733_v5 = vld [vmem:[#allocation2 + $0x510] sm:$0xf0]  ;;  %v2864_v14 = vor.u32 %v3229_v0, %v2861_v1  ;;  %v2323_v18 = vld [vmem:[#allocation2 + $0x1c8] sm:$0xf]  ;;  %v2596_v21 = vor.u32 %v3164_v12, %v2595_v11 }
  0x61   :  { %1437 = vmatpush.bf16.msrb.mxu2 %v2800_v17  ;;  %v2736_v17 = vor.u32 %v3197_v4, %v2733_v5  ;;  %v2163_v42 = vld [vmem:[#allocation2 + $0x88] sm:$0xf]  ;;  %v3088_v45 = vld [vmem:[#allocation2 + $0x194] sm:$0xf0] }
  0x62   :  { %1412 = vmatpush.bf16.msra.mxu1 %v2528_v19  ;;  %1425 = vmatpush.bf16.msra.mxu3 %v2656_v23  ;;  %v3096_v19 = vld [vmem:[#allocation2 + $0x1d4] sm:$0xf0]  ;;  %v2196_v23 = vor.u32 %v3064_v16, %v2195_v15  ;;  %v2291_v44 = vld [vmem:[#allocation2 + $0x188] sm:$0xf] }
  0x63   :  { %1400 = vmatpush.bf16.msra.mxu0 %v2384_v30  ;;  %v2324_v27 = vor.u32 %v3096_v19, %v2323_v18  ;;  %v2307_v30 = vld [vmem:[#allocation2 + $0x1a8] sm:$0xf]  ;;  %v3120_v50 = vld [vmem:[#allocation2 + $0x294] sm:$0xf0]  ;;  %v2292_v53 = vor.u32 %v3088_v45, %v2291_v44 }
  0x64   :  { %v2419_v48 = vld [vmem:[#allocation2 + $0x288] sm:$0xf]  ;;  %v3152_v52 = vld [vmem:[#allocation2 + $0x394] sm:$0xf0] }
  0x65   :  { %1438 = vmatpush.bf16.msrb.mxu2 %v2784_v29  ;;  %v3060_v29 = vld [vmem:[#allocation2 + $0xb4] sm:$0xf0]  ;;  %v2147_v55 = vld [vmem:[#allocation2 + $0x68] sm:$0xf] }
  0x66   :  { %1413 = vmatpush.bf16.msra.mxu1 %v2512_v31  ;;  %1426 = vmatpush.bf16.msra.mxu3 %v2640_v36  ;;  %v3092_v31 = vld [vmem:[#allocation2 + $0x1b4] sm:$0xf0]  ;;  %v2180_v36 = vor.u32 %v3060_v29, %v2179_v28  ;;  %v2275_v58 = vld [vmem:[#allocation2 + $0x168] sm:$0xf] }
  0x67   :  { %1401 = vmatpush.bf16.msra.mxu0 %v2368_v46  ;;  %v2308_v41 = vor.u32 %v3092_v31, %v2307_v30  ;;  %v2436_v46 = vor.u32 %v3124_v38, %v2435_v35  ;;  %v3084_v59 = vld [vmem:[#allocation2 + $0x174] sm:$0xf0]  ;;  %v2403_v0 = vld [vmem:[#allocation2 + $0x268] sm:$0xf] }
  0x68   :  { %v3116_v1 = vld [vmem:[#allocation2 + $0x274] sm:$0xf0]  ;;  %v2276_v5 = vor.u32 %v3084_v59, %v2275_v58  ;;  %v2131_v6 = vld [vmem:[#allocation2 + $0x48] sm:$0xf] }
  0x69   :  { %1439 = vmatpush.bf16.msrb.mxu2 %v2768_v43  ;;  %v3056_v43 = vld [vmem:[#allocation2 + $0x94] sm:$0xf0]  ;;  %v2404_v11 = vor.u32 %v3116_v1, %v2403_v0  ;;  %v2515_v16 = vld [vmem:[#allocation2 + $0x348] sm:$0xf] }
  0x6a   :  { %1414 = vmatpush.bf16.msra.mxu1 %v2496_v47  ;;  %1427 = vmatpush.bf16.msra.mxu3 %v2624_v51  ;;  %v2564_v47 = vor.u32 %v3156_v40, %v2563_v39  ;;  %v2164_v49 = vor.u32 %v3056_v43, %v2163_v42  ;;  %v2547_v51 = vld [vmem:[#allocation2 + $0x388] sm:$0xf]  ;;  %v3148_v4 = vld [vmem:[#allocation2 + $0x374] sm:$0xf0] }
  0x6b   :  { %1402 = vmatpush.bf16.msra.mxu0 %v2352_v2  ;;  %v2548_v62 = vor.u32 %v3152_v52, %v2547_v51  ;;  %v2148_v2 = vor.u32 %v3052_v57, %v2147_v55  ;;  %v3080_v10 = vld [vmem:[#allocation2 + $0x154] sm:$0xf0]  ;;  %v2115_v19 = vld [vmem:[#allocation2 + $0x28] sm:$0xf]  ;;  %v2213_v51 = vld [vmem:[#allocation2 + $0xf8] sm:$0xf0] }
  0x6c   :  { %v3112_v15 = vld [vmem:[#allocation2 + $0x254] sm:$0xf0]  ;;  %v2371_v25 = vld [vmem:[#allocation2 + $0x228] sm:$0xf] }
  0x6d   :  { %1440 = vmatpush.bf16.msrb.mxu2 %v2752_v60  ;;  %v2420_v60 = vor.u32 %v3120_v50, %v2419_v48  ;;  %v3076_v22 = vld [vmem:[#allocation2 + $0x134] sm:$0xf0]  ;;  %v2499_v28 = vld [vmem:[#allocation2 + $0x328] sm:$0xf]  ;;  %v3066_v48 = vld [vmem:[#allocation2 + $0xec] sm:$0xf] }
  0x6e   :  { %1415 = vmatpush.bf16.msra.mxu1 %v2480_v3  ;;  %1428 = vmatpush.bf16.msra.mxu3 %v2608_v7  ;;  %v2531_v3 = vld [vmem:[#allocation2 + $0x368] sm:$0xf]  ;;  %v3048_v7 = vld [vmem:[#allocation2 + $0x54] sm:$0xf0]  ;;  %v2216_v1 = vor.u32 %v3066_v48, %v2213_v51 }
  0x6f   :  { %1454 = vmatpush.bf16.msrb.mxu0 %v2864_v14  ;;  %v2532_v12 = vor.u32 %v3148_v4, %v2531_v3  ;;  %v2132_v14 = vor.u32 %v3048_v7, %v2131_v6  ;;  %v3108_v26 = vld [vmem:[#allocation2 + $0x234] sm:$0xf0]  ;;  %v2099_v30 = vld [vmem:[#allocation2 + $0x8] sm:$0xf]  ;;  %v3098_v3 = vld [vmem:[#allocation2 + $0x1ec] sm:$0xf] }
  0x70   :  { %1403 = vmatmul.bf16.vlgmr.msra.gmra.mxu0 %v3420_v54  ;;  %v3140_v29 = vld [vmem:[#allocation2 + $0x334] sm:$0xf0]  ;;  %v2851_v39 = vld [vmem:[#allocation2 + $0x5e8] sm:$0xf]  ;;  %v2372_v40 = vor.u32 %v3108_v26, %v2371_v25  ;;  %v2341_v4 = vld [vmem:[#allocation2 + $0x1f8] sm:$0xf0] }
  0x71   :  { %1441 = vmatpush.bf16.msrb.mxu2 %v2736_v17  ;;  %1429 = vmatmul.bf16.vlgmr.msra.gmra.mxu3 %v3439_v32  ;;  %v3144_v17 = vld [vmem:[#allocation2 + $0x354] sm:$0xf0]  ;;  %v2355_v43 = vld [vmem:[#allocation2 + $0x208] sm:$0xf]  ;;  %v3062_v6 = vld [vmem:[#allocation2 + $0xcc] sm:$0xf] }
  0x72   :  { %1460 = vmatpush.bf16.msrb.mxu1 %v2212_v9  ;;  %1473 = vmatpush.bf16.msrb.mxu3 %v2340_v13  ;;  %v2259_v9 = vld [vmem:[#allocation2 + $0x148] sm:$0xf]  ;;  %v2516_v24 = vor.u32 %v3144_v17, %v2515_v16  ;;  %v3072_v35 = vld [vmem:[#allocation2 + $0x114] sm:$0xf0]  ;;  %v2197_v7 = vld [vmem:[#allocation2 + $0xd8] sm:$0xf0] }
  0x73   :  { %1486 = vmatpush.bf16.msra.mxu0 %v2468_v20  ;;  %1416 = vmatmul.bf16.vlgmr.msra.gmra.mxu1 %v3424_v63  ;;  %v2387_v13 = vld [vmem:[#allocation2 + $0x248] sm:$0xf]  ;;  %v2260_v18 = vor.u32 %v3080_v10, %v2259_v9  ;;  %v3044_v20 = vld [vmem:[#allocation2 + $0x34] sm:$0xf0]  ;;  %v3094_v16 = vld [vmem:[#allocation2 + $0x1cc] sm:$0xf] }
  0x74   :  { %1442 = vmatmul.bf16.vlgmr.msrb.gmra.mxu2 %v3441_v37  ;;  %v3196_v38 = vld [vmem:[#allocation2 + $0x4f4] sm:$0xf0]  ;;  %v2867_v52 = vld [vmem:[#allocation2 + $0x608] sm:$0xf]  ;;  %v2325_v17 = vld [vmem:[#allocation2 + $0x1d8] sm:$0xf0] }
  0x75   :  { %1499 = vmatpush.bf16.msra.mxu2 %v2596_v21  ;;  %v2243_v21 = vld [vmem:[#allocation2 + $0x128] sm:$0xf]  ;;  %v3228_v42 = vld [vmem:[#allocation2 + $0x5f4] sm:$0xf0] }
  0x76   :  { %1461 = vmatpush.bf16.msrb.mxu1 %v2196_v23  ;;  %1474 = vmatpush.bf16.msrb.mxu3 %v2324_v27  ;;  %v2388_v23 = vor.u32 %v3112_v15, %v2387_v13  ;;  %v2116_v27 = vor.u32 %v3044_v20, %v2115_v19  ;;  %v2244_v31 = vor.u32 %v3076_v22, %v2243_v21  ;;  %v3104_v44 = vld [vmem:[#allocation2 + $0x214] sm:$0xf0]  ;;  %v2707_v57 = vld [vmem:[#allocation2 + $0x4c8] sm:$0xf]  ;;  %v3058_v19 = vld [vmem:[#allocation2 + $0xac] sm:$0xf] }
  0x77   :  { %1487 = vmatpush.bf16.msra.mxu0 %v2452_v33  ;;  %v3040_v33 = vld [vmem:[#allocation2 + $0x14] sm:$0xf0]  ;;  %v2852_v55 = vor.u32 %v3228_v42, %v2851_v39  ;;  %v2356_v59 = vor.u32 %v3104_v44, %v2355_v43  ;;  %v2691_v10 = vld [vmem:[#allocation2 + $0x4a8] sm:$0xf]  ;;  %v2200_v15 = vor.u32 %v3062_v6, %v2197_v7  ;;  %v2181_v20 = vld [vmem:[#allocation2 + $0xb8] sm:$0xf0] }
  0x78   :  { %v2100_v45 = vor.u32 %v3040_v33, %v2099_v30  ;;  %v3192_v58 = vld [vmem:[#allocation2 + $0x4d4] sm:$0xf0]  ;;  %v2819_v13 = vld [vmem:[#allocation2 + $0x5a8] sm:$0xf]  ;;  %v2165_v33 = vld [vmem:[#allocation2 + $0x98] sm:$0xf0] }
  0x79   :  { %1500 = vmatpush.bf16.msra.mxu2 %v2580_v34  ;;  %v2227_v34 = vld [vmem:[#allocation2 + $0x108] sm:$0xf]  ;;  %v3224_v0 = vld [vmem:[#allocation2 + $0x5d4] sm:$0xf0]  ;;  %v3086_v42 = vld [vmem:[#allocation2 + $0x18c] sm:$0xf] }
  0x7a   :  { %1462 = vmatpush.bf16.msrb.mxu1 %v2180_v36  ;;  %1475 = vmatpush.bf16.msrb.mxu3 %v2308_v41  ;;  %v2723_v36 = vld [vmem:[#allocation2 + $0x4e8] sm:$0xf]  ;;  %v2500_v41 = vor.u32 %v3140_v29, %v2499_v28  ;;  %v3216_v26 = vld [vmem:[#allocation2 + $0x594] sm:$0xf0]  ;;  %v3090_v28 = vld [vmem:[#allocation2 + $0x1ac] sm:$0xf] }
  0x7b   :  { %1488 = vmatpush.bf16.msra.mxu0 %v2436_v46  ;;  %v2483_v46 = vld [vmem:[#allocation2 + $0x308] sm:$0xf]  ;;  %v2724_v50 = vor.u32 %v3196_v38, %v2723_v36  ;;  %v2309_v29 = vld [vmem:[#allocation2 + $0x1b8] sm:$0xf0]  ;;  %v3180_v36 = vld [vmem:[#allocation2 + $0x474] sm:$0xf0] }
  0x7c   :  { %v2675_v22 = vld [vmem:[#allocation2 + $0x488] sm:$0xf]  ;;  %v2312_v38 = vor.u32 %v3090_v28, %v2309_v29  ;;  %v2293_v43 = vld [vmem:[#allocation2 + $0x198] sm:$0xf0]  ;;  %v3078_v6 = vld [vmem:[#allocation2 + $0x14c] sm:$0xf] }
  0x7d   :  { %1501 = vmatpush.bf16.msra.mxu2 %v2564_v47  ;;  %v3136_v47 = vld [vmem:[#allocation2 + $0x314] sm:$0xf0]  ;;  %v2803_v25 = vld [vmem:[#allocation2 + $0x588] sm:$0xf]  ;;  %v2261_v7 = vld [vmem:[#allocation2 + $0x158] sm:$0xf0] }
  0x7e   :  { %1463 = vmatpush.bf16.msrb.mxu1 %v2164_v49  ;;  %1476 = vmatpush.bf16.msrb.mxu3 %v2292_v53  ;;  %v2228_v49 = vor.u32 %v3072_v35, %v2227_v34  ;;  %v3232_v53 = vld [vmem:[#allocation2 + $0x614] sm:$0xf0]  ;;  %v2804_v34 = vor.u32 %v3216_v26, %v2803_v25  ;;  %v2659_v35 = vld [vmem:[#allocation2 + $0x468] sm:$0xf]  ;;  %v3038_v26 = vld [vmem:[#allocation2 + $0xc] sm:$0xf] }
  0x7f   :  { %1489 = vmatpush.bf16.msra.mxu0 %v2420_v60  ;;  %v2484_v60 = vor.u32 %v3136_v47, %v2483_v46  ;;  %v2787_v39 = vld [vmem:[#allocation2 + $0x568] sm:$0xf]  ;;  %v2660_v44 = vor.u32 %v3180_v36, %v2659_v35  ;;  %v2149_v46 = vld [vmem:[#allocation2 + $0x78] sm:$0xf0]  ;;  %v3126_v35 = vld [vmem:[#allocation2 + $0x2cc] sm:$0xf] }
  0x80   :  { %2874 = vmatmul.msk.bf16.vlgmr.msrb.gmra.mxu0 %vm1274_vm0, %v3435_v61  ;;  %v2643_v48 = vld [vmem:[#allocation2 + $0x448] sm:$0xf]  ;;  %v2453_v36 = vld [vmem:[#allocation2 + $0x2d8] sm:$0xf0] }
  0x81   :  { %1502 = vmatpush.bf16.msra.mxu2 %v2548_v62  ;;  %v2835_v62 = vld [vmem:[#allocation2 + $0x5c8] sm:$0xf] }
  0x82   :  { %1464 = vmatpush.bf16.msrb.mxu1 %v2148_v2  ;;  %1477 = vmatpush.bf16.msrb.mxu3 %v2276_v5  ;;  %v2868_v2 = vor.u32 %v3232_v53, %v2867_v52  ;;  %v2708_v5 = vor.u32 %v3192_v58, %v2707_v57  ;;  %v2836_v9 = vor.u32 %v3224_v0, %v2835_v62  ;;  %v2771_v51 = vld [vmem:[#allocation2 + $0x548] sm:$0xf]  ;;  %v3208_v52 = vld [vmem:[#allocation2 + $0x554] sm:$0xf0]  ;;  %v2277_v57 = vld [vmem:[#allocation2 + $0x178] sm:$0xf0] }
  0x83   :  { %1490 = vmatpush.bf16.msra.mxu0 %v2404_v11  ;;  %v3188_v11 = vld [vmem:[#allocation2 + $0x4b4] sm:$0xf0]  ;;  %v2772_v62 = vor.u32 %v3208_v52, %v2771_v51  ;;  %v2627_v0 = vld [vmem:[#allocation2 + $0x428] sm:$0xf]  ;;  %v3122_v51 = vld [vmem:[#allocation2 + $0x2ac] sm:$0xf] }
  0x84   :  { %v2437_v52 = vld [vmem:[#allocation2 + $0x2b8] sm:$0xf0] }
  0x85   :  { %1503 = vmatpush.bf16.msra.mxu2 %v2532_v12  ;;  %v2344_v12 = vor.u32 %v3098_v3, %v2341_v4  ;;  %v2755_v3 = vld [vmem:[#allocation2 + $0x528] sm:$0xf]  ;;  %v3204_v4 = vld [vmem:[#allocation2 + $0x534] sm:$0xf0] }
  0x86   :  { %1465 = vmatpush.bf16.msrb.mxu1 %v2132_v14  ;;  %1478 = vmatpush.bf16.msrb.mxu3 %v2260_v18  ;;  %v3220_v14 = vld [vmem:[#allocation2 + $0x5b4] sm:$0xf0]  ;;  %v2692_v18 = vor.u32 %v3188_v11, %v2691_v10  ;;  %v3042_v10 = vld [vmem:[#allocation2 + $0x2c] sm:$0xf]  ;;  %v2117_v11 = vld [vmem:[#allocation2 + $0x38] sm:$0xf0] }
  0x87   :  { %1491 = vmatpush.bf16.msra.mxu0 %v2388_v23  ;;  %v2820_v21 = vor.u32 %v3220_v14, %v2819_v13  ;;  %v3184_v23 = vld [vmem:[#allocation2 + $0x494] sm:$0xf0]  ;;  %v2756_v13 = vor.u32 %v3204_v4, %v2755_v3  ;;  %v3118_v3 = vld [vmem:[#allocation2 + $0x28c] sm:$0xf]  ;;  %v2421_v4 = vld [vmem:[#allocation2 + $0x298] sm:$0xf0] }
  0x88   :  { %v2676_v30 = vor.u32 %v3184_v23, %v2675_v22  ;;  %v3168_v14 = vld [vmem:[#allocation2 + $0x414] sm:$0xf0]  ;;  %v2597_v22 = vld [vmem:[#allocation2 + $0x3f8] sm:$0xf0]  ;;  %v3074_v23 = vld [vmem:[#allocation2 + $0x12c] sm:$0xf] }
  0x89   :  { %1504 = vmatpush.bf16.msra.mxu2 %v2516_v24  ;;  %v2328_v24 = vor.u32 %v3094_v16, %v2325_v17  ;;  %v3200_v16 = vld [vmem:[#allocation2 + $0x514] sm:$0xf0]  ;;  %v2264_v17 = vor.u32 %v3078_v6, %v2261_v7  ;;  %v3150_v6 = vld [vmem:[#allocation2 + $0x38c] sm:$0xf]  ;;  %v2549_v7 = vld [vmem:[#allocation2 + $0x398] sm:$0xf0] }
  0x8a   :  { %1466 = vmatpush.bf16.msrb.mxu1 %v2116_v27  ;;  %1479 = vmatpush.bf16.msrb.mxu3 %v2244_v31  ;;  %v2184_v27 = vor.u32 %v3058_v19, %v2181_v20  ;;  %v3054_v31 = vld [vmem:[#allocation2 + $0x8c] sm:$0xf]  ;;  %v2469_v19 = vld [vmem:[#allocation2 + $0x2f8] sm:$0xf0] }
  0x8b   :  { %1492 = vmatpush.bf16.msra.mxu0 %v2372_v40  ;;  %v3212_v40 = vld [vmem:[#allocation2 + $0x574] sm:$0xf0]  ;;  %v3162_v20 = vld [vmem:[#allocation2 + $0x3ec] sm:$0xf] }
  0x8c   :  { %v2788_v47 = vor.u32 %v3212_v40, %v2787_v39  ;;  %v2581_v40 = vld [vmem:[#allocation2 + $0x3d8] sm:$0xf0] }
  0x8d   :  { %1505 = vmatpush.bf16.msra.mxu2 %v2500_v41  ;;  %v2168_v41 = vor.u32 %v3054_v31, %v2165_v33  ;;  %v2725_v31 = vld [vmem:[#allocation2 + $0x4f8] sm:$0xf0]  ;;  %v2600_v33 = vor.u32 %v3162_v20, %v2597_v22  ;;  %v3214_v22 = vld [vmem:[#allocation2 + $0x58c] sm:$0xf] }
  0x8e   :  { %1467 = vmatpush.bf16.msrb.mxu1 %v2100_v45  ;;  %1480 = vmatpush.bf16.msrb.mxu3 %v2228_v49  ;;  %v3050_v45 = vld [vmem:[#allocation2 + $0x6c] sm:$0xf]  ;;  %v3176_v49 = vld [vmem:[#allocation2 + $0x454] sm:$0xf0]  ;;  %v2533_v20 = vld [vmem:[#allocation2 + $0x378] sm:$0xf0] }
  0x8f   :  { %1493 = vmatpush.bf16.msra.mxu0 %v2356_v59  ;;  %v2152_v53 = vor.u32 %v3050_v45, %v2149_v46  ;;  %v2644_v58 = vor.u32 %v3176_v49, %v2643_v48  ;;  %v3046_v59 = vld [vmem:[#allocation2 + $0x4c] sm:$0xf]  ;;  %v2853_v45 = vld [vmem:[#allocation2 + $0x5f8] sm:$0xf0]  ;;  %v2456_v46 = vor.u32 %v3126_v35, %v2453_v36 }
  0x90   :  { %v2709_v48 = vld [vmem:[#allocation2 + $0x4d8] sm:$0xf0]  ;;  %v3210_v35 = vld [vmem:[#allocation2 + $0x56c] sm:$0xf] }
  0x91   :  { %1506 = vmatpush.bf16.msra.mxu2 %v2484_v60  ;;  %1481 = vmatmul.bf16.vlgmr.msrb.gmra.mxu3 %v3428_v8  ;;  %v2133_v60 = vld [vmem:[#allocation2 + $0x58] sm:$0xf0] }
  0x92   :  { %1512 = vmatpush.bf16.msra.mxu1 %v2724_v50  ;;  %1525 = vmatpush.bf16.msra.mxu3 %v2852_v55  ;;  %v2296_v50 = vor.u32 %v3086_v42, %v2293_v43  ;;  %v3082_v55 = vld [vmem:[#allocation2 + $0x16c] sm:$0xf]  ;;  %v2229_v42 = vld [vmem:[#allocation2 + $0x118] sm:$0xf0] }
  0x93   :  { %1545 = vmatpush.bf16.msrb.mxu0 %v2868_v2  ;;  %1468 = vmatmul.bf16.vlgmr.msrb.gmra.mxu1 %v3422_v56  ;;  %v2280_v2 = vor.u32 %v3082_v55, %v2277_v57  ;;  %v3154_v55 = vld [vmem:[#allocation2 + $0x3ac] sm:$0xf]  ;;  %v2565_v57 = vld [vmem:[#allocation2 + $0x3b8] sm:$0xf0] }
  0x94   :  { %1494 = vmatmul.bf16.vlgmr.msra.gmra.mxu0 %v3420_v54  ;;  %1507 = vmatmul.bf16.vlgmr.msra.gmra.mxu2 %v3424_v63  ;;  %v2789_v36 = vld [vmem:[#allocation2 + $0x578] sm:$0xf0] }
  0x95   :  { %1551 = vmatpush.bf16.msrb.mxu2 %v2216_v1  ;;  %v3172_v1 = vld [vmem:[#allocation2 + $0x434] sm:$0xf0] }
  0x96   :  { %1513 = vmatpush.bf16.msra.mxu1 %v2708_v5  ;;  %1526 = vmatpush.bf16.msra.mxu3 %v2836_v9  ;;  %v2136_v5 = vor.u32 %v3046_v59, %v2133_v60  ;;  %v2628_v9 = vor.u32 %v3172_v1, %v2627_v0  ;;  %v3222_v59 = vld [vmem:[#allocation2 + $0x5cc] sm:$0xf]  ;;  %v2837_v60 = vld [vmem:[#allocation2 + $0x5d8] sm:$0xf0] }
  0x97   :  { %1564 = vmatpush.bf16.msra.mxu0 %v2344_v12  ;;  %v2611_v12 = vld [vmem:[#allocation2 + $0x408] sm:$0xf]  ;;  %v3186_v0 = vld [vmem:[#allocation2 + $0x4ac] sm:$0xf]  ;;  %v2693_v1 = vld [vmem:[#allocation2 + $0x4b8] sm:$0xf0] }
  0x98   :  { %v2612_v25 = vor.u32 %v3168_v14, %v2611_v12  ;;  %v2424_v12 = vor.u32 %v3118_v3, %v2421_v4  ;;  %v2677_v14 = vld [vmem:[#allocation2 + $0x498] sm:$0xf0]  ;;  %v3230_v3 = vld [vmem:[#allocation2 + $0x60c] sm:$0xf] }
  0x99   :  { %1552 = vmatpush.bf16.msrb.mxu2 %v2200_v15  ;;  %v2739_v15 = vld [vmem:[#allocation2 + $0x508] sm:$0xf]  ;;  %v2869_v4 = vld [vmem:[#allocation2 + $0x618] sm:$0xf0] }
  0x9a   :  { %1514 = vmatpush.bf16.msra.mxu1 %v2692_v18  ;;  %1527 = vmatpush.bf16.msra.mxu3 %v2820_v21  ;;  %v3130_v18 = vld [vmem:[#allocation2 + $0x2ec] sm:$0xf]  ;;  %v2120_v21 = vor.u32 %v3042_v10, %v2117_v11  ;;  %v2740_v28 = vor.u32 %v3200_v16, %v2739_v15  ;;  %v2821_v11 = vld [vmem:[#allocation2 + $0x5b8] sm:$0xf0]  ;;  %v2552_v15 = vor.u32 %v3150_v6, %v2549_v7 }
  0x9b   :  { %1565 = vmatpush.bf16.msra.mxu0 %v2328_v24  ;;  %v2245_v24 = vld [vmem:[#allocation2 + $0x138] sm:$0xf0]  ;;  %v2472_v29 = vor.u32 %v3130_v18, %v2469_v19  ;;  %v3218_v10 = vld [vmem:[#allocation2 + $0x5ac] sm:$0xf] }
  0x9c   :  { %v3114_v16 = vld [vmem:[#allocation2 + $0x26c] sm:$0xf]  ;;  %v2824_v18 = vor.u32 %v3218_v10, %v2821_v11 }
  0x9d   :  { %1553 = vmatpush.bf16.msrb.mxu2 %v2184_v27  ;;  %v2101_v27 = vld [vmem:[#allocation2 + $0x18] sm:$0xf0]  ;;  %v3146_v19 = vld [vmem:[#allocation2 + $0x36c] sm:$0xf] }
  0x9e   :  { %1515 = vmatpush.bf16.msra.mxu1 %v2676_v30  ;;  %1528 = vmatpush.bf16.msra.mxu3 %v2804_v34  ;;  %v3194_v30 = vld [vmem:[#allocation2 + $0x4ec] sm:$0xf]  ;;  %v2248_v34 = vor.u32 %v3074_v23, %v2245_v24  ;;  %v2104_v39 = vor.u32 %v3038_v26, %v2101_v27  ;;  %v2805_v23 = vld [vmem:[#allocation2 + $0x598] sm:$0xf0] }
  0x9f   :  { %1566 = vmatpush.bf16.msra.mxu0 %v2312_v38  ;;  %v3158_v38 = vld [vmem:[#allocation2 + $0x3cc] sm:$0xf]  ;;  %v2728_v43 = vor.u32 %v3194_v30, %v2725_v31  ;;  %v2661_v26 = vld [vmem:[#allocation2 + $0x478] sm:$0xf0] }
  0xa0   :  { %v2584_v49 = vor.u32 %v3158_v38, %v2581_v40  ;;  %v3110_v27 = vld [vmem:[#allocation2 + $0x24c] sm:$0xf] }
  0xa1   :  { %1554 = vmatpush.bf16.msrb.mxu2 %v2168_v41  ;;  %v3070_v41 = vld [vmem:[#allocation2 + $0x10c] sm:$0xf] }
  0xa2   :  { %1516 = vmatpush.bf16.msra.mxu1 %v2660_v44  ;;  %1529 = vmatpush.bf16.msra.mxu3 %v2788_v47  ;;  %v3226_v44 = vld [vmem:[#allocation2 + $0x5ec] sm:$0xf] }
  0xa3   :  { %1567 = vmatpush.bf16.msra.mxu0 %v2296_v50  ;;  %v3190_v47 = vld [vmem:[#allocation2 + $0x4cc] sm:$0xf]  ;;  %v2232_v50 = vor.u32 %v3070_v41, %v2229_v42  ;;  %v2645_v41 = vld [vmem:[#allocation2 + $0x458] sm:$0xf0] }
  0xa4   :  { %2875 = vmatmul.msk.bf16.vlgmr.msrb.gmra.mxu0 %vm1274_vm0, %v3435_v61  ;;  %v3142_v31 = vld [vmem:[#allocation2 + $0x34c] sm:$0xf] }
  0xa5   :  { %1555 = vmatpush.bf16.msrb.mxu2 %v2152_v53  ;;  %v2856_v53 = vor.u32 %v3226_v44, %v2853_v45  ;;  %v3174_v40 = vld [vmem:[#allocation2 + $0x44c] sm:$0xf]  ;;  %v2373_v45 = vld [vmem:[#allocation2 + $0x238] sm:$0xf0] }
  0xa6   :  { %1517 = vmatpush.bf16.msra.mxu1 %v2644_v58  ;;  %1530 = vmatpush.bf16.msra.mxu3 %v2772_v62  ;;  %v2712_v58 = vor.u32 %v3190_v47, %v2709_v48  ;;  %v2440_v62 = vor.u32 %v3122_v51, %v2437_v52  ;;  %v3106_v44 = vld [vmem:[#allocation2 + $0x22c] sm:$0xf]  ;;  %v2501_v48 = vld [vmem:[#allocation2 + $0x338] sm:$0xf0] }
  0xa7   :  { %1568 = vmatpush.bf16.msra.mxu0 %v2280_v2  ;;  %v2568_v2 = vor.u32 %v3154_v55, %v2565_v57  ;;  %v3138_v47 = vld [vmem:[#allocation2 + $0x32c] sm:$0xf]  ;;  %v2773_v52 = vld [vmem:[#allocation2 + $0x558] sm:$0xf0]  ;;  %v2376_v55 = vor.u32 %v3106_v44, %v2373_v45  ;;  %v3243_v44 = vld [vmem:[#allocation5 + $0x50] sm:$0xff] }
  0xa8   :  { %v3206_v51 = vld [vmem:[#allocation2 + $0x54c] sm:$0xf] }
  0xa9   :  { %1556 = vmatpush.bf16.msrb.mxu2 %v2136_v5  ;;  %v2840_v5 = vor.u32 %v3222_v59, %v2837_v60  ;;  %v3170_v57 = vld [vmem:[#allocation2 + $0x42c] sm:$0xf]  ;;  %v2504_v59 = vor.u32 %v3138_v47, %v2501_v48  ;;  %v3233_v48 = vld [vmem:[#allocation5] sm:$0xff] }
  0xaa   :  { %1518 = vmatpush.bf16.msra.mxu1 %v2628_v9  ;;  %1531 = vmatpush.bf16.msra.mxu3 %v2756_v13  ;;  %v2696_v9 = vor.u32 %v3186_v0, %v2693_v1  ;;  %v3182_v13 = vld [vmem:[#allocation2 + $0x48c] sm:$0xf]  ;;  %v2776_v1 = vor.u32 %v3206_v51, %v2773_v52  ;;  %v3241_v51 = vld [vmem:[#allocation5 + $0x40] sm:$0xff] }
  0xab   :  { %1569 = vmatpush.bf16.msra.mxu0 %v2264_v17  ;;  %v2405_v17 = vld [vmem:[#allocation2 + $0x278] sm:$0xf0]  ;;  %v3102_v60 = vld [vmem:[#allocation2 + $0x20c] sm:$0xf] }
  0xac   :  { %v2408_v24 = vor.u32 %v3114_v16, %v2405_v17  ;;  %v3134_v0 = vld [vmem:[#allocation2 + $0x30c] sm:$0xf]  ;;  %v2872_v16 = vor.u32 %v3230_v3, %v2869_v4  ;;  %v3256_v3 = vld [vmem:[#allocation5 + $0xb8] sm:$0xff] }
  0xad   :  { %1557 = vmatpush.bf16.msrb.mxu2 %v2120_v21  ;;  %v3202_v7 = vld [vmem:[#allocation2 + $0x52c] sm:$0xf] }
  0xae   :  { %1519 = vmatpush.bf16.msra.mxu1 %v2612_v25  ;;  %1532 = vmatpush.bf16.msra.mxu3 %v2740_v28  ;;  %v3178_v25 = vld [vmem:[#allocation2 + $0x46c] sm:$0xf]  ;;  %v2389_v28 = vld [vmem:[#allocation2 + $0x258] sm:$0xf0] }
  0xaf   :  { %1570 = vmatpush.bf16.msra.mxu0 %v2248_v34  ;;  %v2664_v34 = vor.u32 %v3178_v25, %v2661_v26  ;;  %v3239_v25 = vld [vmem:[#allocation5 + $0x30] sm:$0xff]  ;;  %v3234_v45 = vld [vmem:[#allocation5 + $0x8] sm:$0xff] }
  0xb1   :  { %1520 = vmatmul.bf16.vlgmr.msra.gmra.mxu1 %v3439_v32  ;;  %1558 = vmatpush.bf16.msrb.mxu2 %v2104_v39  ;;  %v3463_v21 = vpop.f32.mrf.mxu0  ;;  %v2392_v39 = vor.u32 %v3110_v27, %v2389_v28  ;;  %v3238_v28 = vld [vmem:[#allocation5 + $0x28] sm:$0xff] }
  0xb2   :  { %1577 = vmatpush.bf16.msrb.mxu1 %v2472_v29  ;;  %1590 = vmatpush.bf16.msrb.mxu3 %v2600_v33  ;;  %v2808_v29 = vor.u32 %v3214_v22, %v2805_v23  ;;  %v2517_v33 = vld [vmem:[#allocation2 + $0x358] sm:$0xf0] }
  0xb3   :  { %1533 = vmatmul.bf16.vlgmr.msra.gmra.mxu3 %v3441_v37  ;;  %1571 = vmatpush.bf16.msra.mxu0 %v2232_v50  ;;  %v2520_v42 = vor.u32 %v3142_v31, %v2517_v33  ;;  %v2648_v50 = vor.u32 %v3174_v40, %v2645_v41  ;;  %v2741_v22 = vld [vmem:[#allocation2 + $0x518] sm:$0xf0]  ;;  %v3235_v40 = vld [vmem:[#allocation5 + $0x10] sm:$0xff] }
  0xb4   :  { %1559 = vmatmul.bf16.vlgmr.msrb.gmra.mxu2 %v3422_v56  ;;  %v2680_v56 = vor.u32 %v3182_v13, %v2677_v14  ;;  %v3465_v30 = vpop.f32.mrf.mxu1  ;;  %v2613_v13 = vld [vmem:[#allocation2 + $0x418] sm:$0xf0] }
  0xb5   :  { %1603 = vmatpush.bf16.msra.mxu2 %v2728_v43  ;;  %v3248_v23 = vld [vmem:[#allocation5 + $0x78] sm:$0xff] }
  0xb6   :  { %1578 = vmatpush.bf16.msrb.mxu1 %v2456_v46  ;;  %1591 = vmatpush.bf16.msrb.mxu3 %v2584_v49  ;;  %v2792_v46 = vor.u32 %v3210_v35, %v2789_v36  ;;  %v3236_v35 = vld [vmem:[#allocation5 + $0x18] sm:$0xff] }
  0xb7   :  { %1616 = vmatpush.bf16.msrb.mxu0 %v2856_v53  ;;  %v3467_v38 = vpop.f32.mrf.mxu2  ;;  %v3474_v53 = vld [vmem:[%s3525_s2] sm:$0xf] }
  0xb8   :  { %1572 = vmatmul.bf16.vlgmr.msra.gmra.mxu0 %v3428_v8  ;;  %v2536_v8 = vor.u32 %v3146_v19, %v2533_v20  ;;  %v3469_v43 = vpop.f32.mrf.mxu3  ;;  %v286_v14 = vperm.slane %v3474_v53, 0 }
  0xb9   :  { %1604 = vmatpush.bf16.msra.mxu2 %v2712_v58  ;;  %v1289_v49 = vpop.f32.mrf.mxu0  ;;  %v2629_v58 = vld [vmem:[#allocation2 + $0x438] sm:$0xf0] }
  0xba   :  { %1579 = vmatpush.bf16.msrb.mxu1 %v2440_v62  ;;  %1592 = vmatpush.bf16.msrb.mxu3 %v2568_v2  ;;  %v2357_v62 = vld [vmem:[#allocation2 + $0x218] sm:$0xf0]  ;;  %v2632_v6 = vor.u32 %v3170_v57, %v2629_v58 }
  0xbb   :  { %1617 = vmatpush.bf16.msrb.mxu0 %v2840_v5  ;;  %v2485_v2 = vld [vmem:[#allocation2 + $0x318] sm:$0xf0]  ;;  %v2360_v11 = vor.u32 %v3102_v60, %v2357_v62 }
  0xbc   :  { %v1302_v5 = vpop.f32.mrf.mxu1 }
  0xbd   :  { %1605 = vmatpush.bf16.msra.mxu2 %v2696_v9  ;;  %v2757_v9 = vld [vmem:[#allocation2 + $0x538] sm:$0xf0] }
  0xbe   :  { %1580 = vmatpush.bf16.msrb.mxu1 %v2424_v12  ;;  %1593 = vmatpush.bf16.msrb.mxu3 %v2552_v15  ;;  %v3166_v12 = vld [vmem:[#allocation2 + $0x40c] sm:$0xf]  ;;  %v2488_v15 = vor.u32 %v3134_v0, %v2485_v2  ;;  %v2760_v19 = vor.u32 %v3202_v7, %v2757_v9 }
  0xbf   :  { %1618 = vmatpush.bf16.msrb.mxu0 %v2824_v18  ;;  %v1315_v10 = vpop.f32.mrf.mxu2  ;;  %v3240_v18 = vld [vmem:[#allocation5 + $0x38] sm:$0xff]  ;;  %v2616_v20 = vor.u32 %v3166_v12, %v2613_v13 }
  0xc0   :  { %v1328_v17 = vpop.f32.mrf.mxu3  ;;  %v3254_v10 = vld [vmem:[#allocation5 + $0xa8] sm:$0xff] }
  0xc1   :  { %1606 = vmatpush.bf16.msra.mxu2 %v2680_v56  ;;  %v3198_v56 = vld [vmem:[#allocation2 + $0x50c] sm:$0xf] }
  0xc2   :  { %1581 = vmatpush.bf16.msrb.mxu1 %v2408_v24  ;;  %1594 = vmatpush.bf16.msrb.mxu3 %v2536_v8  ;;  %v1288_v24 = vadd.f32 %v3463_v21, %v286_v14  ;;  %v2744_v26 = vor.u32 %v3198_v56, %v2741_v22  ;;  %v3247_v8 = vld [vmem:[#allocation5 + $0x70] sm:$0xff] }
  0xc3   :  { %1619 = vmatpush.bf16.msrb.mxu0 %v2808_v29  ;;  %v3246_v29 = vld [vmem:[#allocation5 + $0x68] sm:$0xff] }
  0xc4   :  { %v1301_v27 = vadd.f32 %v3465_v30, %v1288_v24 }
  0xc5   :  { %1607 = vmatpush.bf16.msra.mxu2 %v2664_v34  ;;  %v3245_v34 = vld [vmem:[#allocation5 + $0x60] sm:$0xff] }
  0xc6   :  { %1582 = vmatpush.bf16.msrb.mxu1 %v2392_v39  ;;  %1595 = vmatpush.bf16.msrb.mxu3 %v2520_v42  ;;  %v1314_v31 = vadd.f32 %v3467_v38, %v1301_v27  ;;  %v3244_v39 = vld [vmem:[#allocation5 + $0x58] sm:$0xff] }
  0xc7   :  { %1620 = vmatpush.bf16.msrb.mxu0 %v2792_v46  ;;  %v1365_v21 = vpop.f32.mrf.mxu2  ;;  %v3242_v46 = vld [vmem:[#allocation5 + $0x48] sm:$0xff] }
  0xc8   :  { %v1327_v30 = vadd.f32 %v3469_v43, %v1314_v31  ;;  %v288_v31 = vperm.slane %v3474_v53, 2 }
  0xc9   :  { %1608 = vmatpush.bf16.msra.mxu2 %v2648_v50 }
  0xca   :  { %1583 = vmatpush.bf16.msrb.mxu1 %v2376_v55  ;;  %1596 = vmatpush.bf16.msrb.mxu3 %v2504_v59 }
  0xcb   :  { %1621 = vmatpush.bf16.msrb.mxu0 %v2776_v1 }
  0xcd   :  { %1609 = vmatpush.bf16.msra.mxu2 %v2632_v6  ;;  %v1339_v33 = vpop.f32.mrf.mxu0  ;;  %v3255_v6 = vld [vmem:[#allocation5 + $0xb0] sm:$0xff] }
  0xce   :  { %1584 = vmatpush.bf16.msrb.mxu1 %v2360_v11  ;;  %1597 = vmatpush.bf16.msrb.mxu3 %v2488_v15  ;;  %v3253_v15 = vld [vmem:[#allocation5 + $0xa0] sm:$0xff] }
  0xcf   :  { %1622 = vmatpush.bf16.msrb.mxu0 %v2760_v19  ;;  %v1367_v36 = vpop.f32.mrf.mxu2  ;;  %v3252_v19 = vld [vmem:[#allocation5 + $0x98] sm:$0xff] }
  0xd1   :  { %1585 = vmatmul.bf16.vlgmr.msrb.gmra.mxu1 %v3420_v54  ;;  %1610 = vmatpush.bf16.msra.mxu2 %v2616_v20  ;;  %v3237_v54 = vld [vmem:[#allocation5 + $0x20] sm:$0xff]  ;;  %v3251_v20 = vld [vmem:[#allocation5 + $0x90] sm:$0xff] }
  0xd2   :  { %1636 = vmatpush.bf16.msra.mxu1 %v2872_v16  ;;  %1910 = vmatpush.bf16.msra.mxu3 %v3240_v18 }
  0xd3   :  { %1598 = vmatmul.bf16.vlgmr.msrb.gmra.mxu3 %v3424_v63  ;;  %1623 = vmatpush.bf16.msrb.mxu0 %v2744_v26  ;;  %v1352_v63 = vpop.f32.mrf.mxu1 }
  0xd4   :  { %1611 = vmatmul.bf16.vlgmr.msra.gmra.mxu2 %v3439_v32  ;;  %v1340_v32 = vadd.f32 %v1339_v33, %v1327_v30  ;;  %v3262_v30 = vld [vmem:[#allocation5 + $0xe8] sm:$0xff] }
  0xd5   :  { %1936 = vmatpush.bf16.msrb.mxu2 %v3256_v3 }
  0xd6   :  { %1923 = vmatpush.bf16.msrb.mxu1 %v3248_v23  ;;  %1911 = vmatpush.bf16.msra.mxu3 %v3239_v25  ;;  %v1353_v41 = vadd.f32 %v1352_v63, %v1340_v32  ;;  %v1378_v38 = vpop.f32.mrf.mxu3  ;;  %v3250_v23 = vld [vmem:[#allocation5 + $0x88] sm:$0xff]  ;;  %v3249_v25 = vld [vmem:[#allocation5 + $0x80] sm:$0xff] }
  0xd7   :  { %1624 = vmatmul.bf16.vlgmr.msrb.gmra.mxu0 %v3441_v37  ;;  %v1341_v37 = vpop.f32.mrf.mxu0  ;;  %v1391_v47 = vpop.f32.mrf.mxu2  ;;  %v3261_v32 = vld [vmem:[#allocation5 + $0xe0] sm:$0xff] }
  0xd8   :  { %v1366_v43 = vadd.f32 %v1365_v21, %v1353_v41  ;;  %v3263_v21 = vld [vmem:[#allocation5 + $0xf0] sm:$0xff]  ;;  %v3260_v41 = vld [vmem:[#allocation5 + $0xd8] sm:$0xff] }
  0xd9   :  { %1937 = vmatpush.bf16.msrb.mxu2 %v3255_v6 }
  0xda   :  { %1924 = vmatpush.bf16.msrb.mxu1 %v3247_v8  ;;  %1912 = vmatpush.bf16.msra.mxu3 %v3238_v28  ;;  %v1642_v49 = vmax.f32 %v1366_v43, 0.0  ;;  %v3264_v28 = vld [vmem:[#allocation5 + $0xf8] sm:$0xff] }
  0xdb   :  { %v1354_v42 = vpop.f32.mrf.mxu1  ;;  %1949 = vmatpush.bf16.msra.mxu0 %v3264_v28 }
  0xdc   :  { %v1646_v52 = vpack.c.bf16 %v1642_v49, %v1642_v49  ;;  %v3258_v49 = vld [vmem:[#allocation5 + $0xc8] sm:$0xff] }
  0xdd   :  { %1938 = vmatpush.bf16.msrb.mxu2 %v3254_v10 }
  0xde   :  { %1925 = vmatpush.bf16.msrb.mxu1 %v3246_v29  ;;  %1913 = vmatpush.bf16.msra.mxu3 %v3237_v54  ;;  %v1380_v50 = vpop.f32.mrf.mxu3 }
  0xdf   :  { %v1393_v55 = vpop.f32.mrf.mxu2  ;;  %1950 = vmatpush.bf16.msra.mxu0 %v3263_v21  ;;  %v3265_v21 = vld [vmem:[%s3528_s5] sm:$0xff] }
  0xe1   :  { %2876 = vmatmul.msk.bf16.vlgmr.msra.gmra.mxu1 %vm1274_vm0, %v3435_v61  ;;  %v287_v61 = vperm.slane %v3474_v53, 1  ;;  %1939 = vmatpush.bf16.msrb.mxu2 %v3253_v15 }
  0xe2   :  { %1926 = vmatpush.bf16.msrb.mxu1 %v3245_v34  ;;  %1914 = vmatpush.bf16.msra.mxu3 %v3236_v35 }
  0xe3   :  { %v1379_v57 = vadd.f32 %v1378_v38, %v287_v61  ;;  %1951 = vmatpush.bf16.msra.mxu0 %v3262_v30 }
  0xe5   :  { %v1392_v58 = vadd.f32 %v1391_v47, %v1379_v57  ;;  %1940 = vmatpush.bf16.msrb.mxu2 %v3252_v19  ;;  %v289_v57 = vperm.slane %v3474_v53, 3 }
  0xe6   :  { %1927 = vmatpush.bf16.msrb.mxu1 %v3244_v39  ;;  %1915 = vmatpush.bf16.msra.mxu3 %v3235_v40 }
  0xe7   :  { %1952 = vmatpush.bf16.msra.mxu0 %v3261_v32 }
  0xe9   :  { %1941 = vmatpush.bf16.msrb.mxu2 %v3251_v20 }
  0xea   :  { %1928 = vmatpush.bf16.msrb.mxu1 %v3243_v44  ;;  %1916 = vmatpush.bf16.msra.mxu3 %v3234_v45  ;;  %v3259_v44 = vld [vmem:[#allocation5 + $0xd0] sm:$0xff] }
  0xeb   :  { %1953 = vmatpush.bf16.msra.mxu0 %v3260_v41 }
  0xed   :  { %v1404_v59 = vpop.f32.mrf.mxu0  ;;  %1942 = vmatpush.bf16.msrb.mxu2 %v3250_v23  ;;  %v3271_v23 = vld [vmem:[%s3528_s5 + $0x30] sm:$0xff] }
  0xee   :  { %1929 = vmatpush.bf16.msrb.mxu1 %v3242_v46  ;;  %1917 = vmatpush.bf16.msra.mxu3 %v3233_v48  ;;  %v1405_v60 = vadd.f32 %v1404_v59, %v1392_v58 }
  0xef   :  { %1954 = vmatpush.bf16.msra.mxu0 %v3259_v44 }
  0xf0   :  { %v1417_v62 = vpop.f32.mrf.mxu1 }
  0xf1   :  { %1918 = vmatmul.bf16.vlgmr.msra.gmra.mxu3 %v1646_v52  ;;  %v1418_v0 = vadd.f32 %v1417_v62, %v1405_v60  ;;  %1943 = vmatpush.bf16.msrb.mxu2 %v3249_v25  ;;  %v3257_v52 = vld [vmem:[#allocation5 + $0xc0] sm:$0xff]  ;;  %v3269_v25 = vld [vmem:[%s3528_s5 + $0x20] sm:$0xff] }
  0xf2   :  { %1930 = vmatpush.bf16.msrb.mxu1 %v3241_v51 }
  0xf3   :  { %1955 = vmatpush.bf16.msra.mxu0 %v3258_v49 }
  0xf4   :  { %v1430_v2 = vpop.f32.mrf.mxu3 }
  0xf5   :  { %v1406_v1 = vpop.f32.mrf.mxu0  ;;  %v1431_v4 = vadd.f32 %v1430_v2, %v1418_v0 }
  0xf7   :  { %v1443_v5 = vpop.f32.mrf.mxu2  ;;  %1956 = vmatpush.bf16.msra.mxu0 %v3257_v52 }
  0xf8   :  { %v1419_v7 = vpop.f32.mrf.mxu1  ;;  %v1444_v9 = vadd.f32 %v1443_v5, %v1431_v4 }
  0xfc   :  { %v1432_v12 = vpop.f32.mrf.mxu3 }
  0xfd   :  { %v1456_v11 = vpop.f32.mrf.mxu0 }
  0xfe   :  { %v1457_v13 = vadd.f32 %v1456_v11, %v1444_v9 }
  0xff   :  { %v1445_v14 = vpop.f32.mrf.mxu2 }
 0x100   :  { %v1643_v16 = vmax.f32 %v1457_v13, 0.0 }
 0x102   :  { %v1647_v17 = vpack.c.bf16 %v1643_v16, %v1643_v16 }
 0x104   :  { %1931 = vmatmul.bf16.vlgmr.msrb.gmra.mxu1 %v1647_v17  ;;  %v3280_v17 = vld [vmem:[%s3527_s4] ss:$0 sm:$0xff] }
 0x105   :  { %v1458_v18 = vpop.f32.mrf.mxu0 }
 0x110   :  { %v1469_v22 = vpop.f32.mrf.mxu1 }
 0x111   :  { %v1495_v56 = vpop.f32.mrf.mxu0  ;;  %v1470_v63 = vadd.f32 %v1469_v22, %v288_v31  ;;  %v3272_v22 = vld [vmem:[%s3528_s5 + $0x38] sm:$0xff] }
 0x112   :  { %2032 = vmatpush.bf16.msrb.mxu3 %v3272_v22 }
 0x114   :  { %v1482_v24 = vpop.f32.mrf.mxu3 }
 0x115   :  { %v1483_v34 = vadd.f32 %v1482_v24, %v1470_v63  ;;  %v3270_v24 = vld [vmem:[%s3528_s5 + $0x28] sm:$0xff] }
 0x116   :  { %2033 = vmatpush.bf16.msrb.mxu3 %v3271_v23 }
 0x117   :  { %v1508_v8 = vpop.f32.mrf.mxu2  ;;  %v1496_v36 = vadd.f32 %v1495_v56, %v1483_v34 }
 0x118   :  { %v1471_v27 = vpop.f32.mrf.mxu1 }
 0x119   :  { %v1497_v26 = vpop.f32.mrf.mxu0  ;;  %v1509_v40 = vadd.f32 %v1508_v8, %v1496_v36  ;;  %v3267_v8 = vld [vmem:[%s3528_s5 + $0x10] sm:$0xff]  ;;  %v3266_v27 = vld [vmem:[%s3528_s5 + $0x8] sm:$0xff] }
 0x11a   :  { %2034 = vmatpush.bf16.msrb.mxu3 %v3270_v24  ;;  %v3268_v26 = vld [vmem:[%s3528_s5 + $0x18] sm:$0xff]  ;;  %s3370_s5 = smov [#allocation7]  }
 0x11c   :  { %v1484_v29 = vpop.f32.mrf.mxu3 }
 0x11e   :  { %2035 = vmatpush.bf16.msrb.mxu3 %v3269_v25 }
 0x11f   :  { %v1510_v33 = vpop.f32.mrf.mxu2 }
 0x121   :  { %v1547_v54 = vpop.f32.mrf.mxu0 }
 0x122   :  { %2036 = vmatpush.bf16.msrb.mxu3 %v3268_v26 }
 0x126   :  { %2037 = vmatpush.bf16.msrb.mxu3 %v3267_v8 }
 0x129   :  { %v1549_v35 = vpop.f32.mrf.mxu0 }
 0x12a   :  { %2038 = vmatpush.bf16.msrb.mxu3 %v3266_v27  ;;  %v3281_v35 = vld [vmem:[%s3529_s6] ss:$0 sm:$0xff]  ;;  %s2076_s6 = sshll.u32 %s3370_s5, 4  ;;  %s2077_s6 = int_to_ptr.vmem [resolvable:$true] %s2076_s6 }
 0x12e   :  { %v1521_v39 = vpop.f32.mrf.mxu1  ;;  %2039 = vmatpush.bf16.msrb.mxu3 %v3265_v21 }
 0x12f   :  { %v1522_v37 = vadd.f32 %v1521_v39, %v1509_v40 }
 0x135   :  { %v1573_v38 = vpop.f32.mrf.mxu0 }
 0x136   :  { %v1534_v42 = vpop.f32.mrf.mxu3  ;;  %v1523_v43 = vpop.f32.mrf.mxu1 }
 0x137   :  { %v1535_v45 = vadd.f32 %v1534_v42, %v1522_v37  ;;  %v1560_v47 = vpop.f32.mrf.mxu2 }
 0x138   :  { %v1561_v58 = vadd.f32 %v1560_v47, %v289_v57 }
 0x139   :  { %v1548_v46 = vadd.f32 %v1547_v54, %v1535_v45 }
 0x13a   :  { %v1574_v60 = vadd.f32 %v1573_v38, %v1561_v58 }
 0x13b   :  { %v1644_v48 = vmax.f32 %v1548_v46, 0.0 }
 0x13d   :  { %v1648_v50 = vpack.c.bf16 %v1644_v48, %v1644_v48  ;;  %v1575_v51 = vpop.f32.mrf.mxu0 }
 0x13e   :  { %v1536_v61 = vpop.f32.mrf.mxu3 }
 0x13f   :  { %1944 = vmatmul.bf16.vlgmr.msrb.gmra.mxu2 %v1648_v50  ;;  %v1562_v55 = vpop.f32.mrf.mxu2 }
 0x14e   :  { %v1586_v59 = vpop.f32.mrf.mxu1 }
 0x14f   :  { %v1587_v62 = vadd.f32 %v1586_v59, %v1574_v60 }
 0x154   :  { %v1625_v1 = vpop.f32.mrf.mxu0 }
 0x156   :  { %v1599_v0 = vpop.f32.mrf.mxu3  ;;  %v1588_v3 = vpop.f32.mrf.mxu1 }
 0x157   :  { %v1600_v2 = vadd.f32 %v1599_v0, %v1587_v62  ;;  %v1612_v4 = vpop.f32.mrf.mxu2 }
 0x159   :  { %v1613_v5 = vadd.f32 %v1612_v4, %v1600_v2 }
 0x15b   :  { %v1626_v9 = vadd.f32 %v1625_v1, %v1613_v5 }
 0x15c   :  { %v1627_v7 = vpop.f32.mrf.mxu0 }
 0x15e   :  { %v1601_v6 = vpop.f32.mrf.mxu3  ;;  %v1638_v10 = vpop.f32.mrf.mxu1 }
 0x15f   :  { %v1639_v11 = vadd.f32 %v1638_v10, %v1626_v9  ;;  %v1614_v12 = vpop.f32.mrf.mxu2 }
 0x161   :  { %v1645_v13 = vmax.f32 %v1639_v11, 0.0 }
 0x163   :  { %v1649_v14 = vpack.c.bf16 %v1645_v13, %v1645_v13 }
 0x165   :  { %1957 = vmatmul.bf16.vlgmr.msra.gmra.mxu0 %v1649_v14 }
 0x166   :  { %v1640_v53 = vpop.f32.mrf.mxu1 }
 0x174   :  { %v1919_v15 = vpop.f32.mrf.mxu3 }
 0x175   :  { %v1920_v18 = vadd.f32 %v3280_v17, %v1919_v15 }
 0x17c   :  { %v1921_v16 = vpop.f32.mrf.mxu3 }
 0x181   :  { %v1932_v19 = vpop.f32.mrf.mxu1 }
 0x182   :  { %v1933_v20 = vadd.f32 %v1932_v19, %v1920_v18 }
 0x189   :  { %v1934_v56 = vpop.f32.mrf.mxu1 }
 0x1c2   :  { %v1945_v28 = vpop.f32.mrf.mxu2 }
 0x1c3   :  { %v1946_v31 = vadd.f32 %v1945_v28, %v1933_v20 }
 0x1ca   :  { %v1947_v29 = vpop.f32.mrf.mxu2 }
 0x1e2   :  { %v1958_v54 = vpop.f32.mrf.mxu0 }
 0x1e3   :  { %v1959_v33 = vadd.f32 %v1958_v54, %v1946_v31 }
 0x1e5   :  { %v1962_v63 = vmax.f32 %v1959_v33, 0.0 }
 0x1e7   :  { %v1963_v34 = vpack.c.bf16 %v1962_v63, %v1962_v63 }
 0x1e9   :  { %2040 = vmatmul.bf16.vlgmr.msrb.gmra.mxu3 %v1963_v34 }
 0x1ea   :  { %v1960_v30 = vpop.f32.mrf.mxu0 }
 0x26c   :  { %v2041_v32 = vpop.f32.mrf.mxu3 }
 0x26d   :  { %v2042_v36 = vadd.f32 %v3281_v35, %v2041_v32 }
 0x26f   :  { %v2046_v39 = vsel %vm2045_vm1, %v2042_v36, -inf }
 0x270   :  { %2047 = vmax.xlane.f32.xlu0 %v2046_v39 }
 0x274   :  { %v2043_v40 = vpop.f32.mrf.mxu3 }
 0x2e3   :  { %v2048_v41 = vpop.xlane.xlu0 %2047 }
 0x2e4   :  { %v2049_v37 = vsub.f32 %v2042_v36, %v2048_v41 }
 0x2e6   :  { %v2050_v38 = vmul.f32 1.442695, %v2049_v37 }
 0x2e8   :  { %3282 = vpow2.f32 %v2050_v38 }
 0x2ee   :  { %v3283_v42 = vpop.eup %3282 }
 0x2ef   :  { %v2052_v44 = vsel %vm2045_vm1, %v3283_v42, 0.0 }
 0x2f0   :  { %2053 = vadd.xlane.f32.xlu0 %v2052_v44 }
 0x363   :  { %v2054_v45 = vpop.xlane.xlu0 %2053 }
 0x364   :  { %3284 = vrcp.f32 %v2054_v45  ;;  %v2066_v48 = vand.u32 2147483648, %v2054_v45  ;;  %v2064_v50 = vand.u32 2147483647, %v2054_v45  ;;  %vm2060_vm3 = vweird.f32 %v2054_v45 }
 0x366   :  { %v2067_v61 = vor.u32 1.1754944e-38, %v2066_v48  ;;  %vm2065_vm5 = vcmp.eq.f32.partialorder %v2064_v50, 8.507059e+37 }
 0x36a   :  { %v3285_v43 = vpop.eup %3284 }
 0x36b   :  { %v2056_v46 = vmul.f32 %v3285_v43, %v2054_v45  ;;  %vm2061_vm2 = vweird.f32 %v3285_v43 }
 0x36c   :  { %vm2062_vm4 = vmor %vm2060_vm3, %vm2061_vm2 }
 0x36d   :  { %v2057_v47 = vsub.f32 1.0, %v2056_v46 }
 0x36f   :  { %v2058_v49 = vmul.f32 %v3285_v43, %v2057_v47 }
 0x371   :  { %v2059_v51 = vadd.f32 %v3285_v43, %v2058_v49 }
 0x373   :  { %v2063_v52 = vsel %vm2062_vm4, %v3285_v43, %v2059_v51 }
 0x374   :  { %v2068_v55 = vsel %vm2065_vm5, %v2067_v61, %v2063_v52 }
 0x375   :  { %v2069_v57 = vmul.f32 %v3283_v42, %v2068_v55 }
 0x377   :  { %2070 = vst [vmem:[#allocation7] sm:$0x3] %v2069_v57 }
 0x378   :  { %2081 = dma.vmem_to_hbm [thread:$0]  %s2077_s6, 32, %s2079_s1, [#allocation4]  }
 0x379   :  { %3362 = dma.done.wait [#allocation4], 32  }
 0x37a   :  { %3363 = vsyncadd [#allocation4], 4294967264 }
 0x37b   :  { %2086 = vsyncpa [#allocation3], 1 }
 0x37c   :  { %2087 = vsyncpa [#allocation6], 1 }
 0x37d   :  { %2088 = vsyncpa [#allocation4], 1 }

</bundles_post_ra>
